<compile_context>
chip_gen: v6e
topology: v6e:2x2x1
jax: 0.10.0
libtpu: 0.0.40
codegen_flags: <defaults>
</compile_context>

<pallas_src>
import jax
import jax.numpy as jnp
from jax import lax
from jax.experimental import pallas as pl
from jax.experimental.pallas import tpu as pltpu


def _make_kernel(*, TH, Cin, Cp, Cmain, Cout, Wo, use_halo):
    """One grid step = one batch element x TH output rows."""
    S = 2 * Cp           # merged-row stride between consecutive output rows
    K = 3 * Cp           # merged rows covered by one 3x3 window
    NEG = float("-inf")  # Python literal (NOT a captured jnp constant)

    def kernel(xm_ref, xh_ref, w9_ref, scale_ref, bias_ref, o_ref):
        # xm_ref:   (2, S*TH, Wo+1) main slab (or (2, M, Wo+1) when un-tiled);
        #           [e, (2i+ky)*Cp + c, k] = padded pixel (chan c, padded row
        #           2*(TH*t+i)+ky, padded col 2k+e)
        # xh_ref:   (2, 8, Wo+1)   halo: first rows of the next slab
        # w9_ref:   (3, Cmain, K)  conv weights (BN scale folded), [kx, o, ky*Cp+c]
        # scale/bias_ref: (Cout, 1) fused eval-mode BN affine
        # o_ref:    (Cout, TH*Wo)  lane-dense flattened (rows, cols) output block
        t = pl.program_id(1)

        # hoisted loop invariants
        w_kx0 = w9_ref[0]                                   # (Cmain, K)
        w_kx1 = w9_ref[1]
        w_kx2 = w9_ref[2]
        bi_m = jnp.broadcast_to(bias_ref[0:Cmain, :], (Cmain, Wo))
        sc_e = jnp.broadcast_to(scale_ref[Cmain:Cout, :], (Cin, Wo))
        bi_e = jnp.broadcast_to(bias_ref[Cmain:Cout, :], (Cin, Wo))
        left_col = lax.broadcasted_iota(jnp.int32, (Cin, Wo), 1) == 0

        def emit_row(i, s_even, s_odd):
            # s_even / s_odd: (K, Wo+1); merged row index = ky*Cp + c.
            # ---- conv branch: three depth-K MXU contractions (one per kx) ----
            acc = jnp.dot(w_kx0, s_even[:, 0:Wo],
                          preferred_element_type=jnp.float32)
            acc = acc + jnp.dot(w_kx1, s_odd[:, 0:Wo],
                                preferred_element_type=jnp.float32)
            acc = acc + jnp.dot(w_kx2, s_even[:, 1:Wo + 1],
                                preferred_element_type=jnp.float32)
            conv = jnp.maximum(acc + bi_m, 0.0)

            # ---- maxpool branch (VPU): max over ky, then over kx ----
            e0 = s_even[0:Cin, :]
            o0 = s_odd[0:Cin, :]
            if i == 0:  # only the global first output row sees the top zero pad
                e0 = jnp.where(t == 0, NEG, e0)
                o0 = jnp.where(t == 0, NEG, o0)
            p_e = jnp.maximum(jnp.maximum(e0, s_even[Cp:Cp + Cin, :]),
                              s_even[2 * Cp:2 * Cp + Cin, :])
            p_o = jnp.maximum(jnp.maximum(o0, s_odd[Cp:Cp + Cin, :]),
                              s_odd[2 * Cp:2 * Cp + Cin, :])
            pool = jnp.maximum(
                jnp.maximum(jnp.where(left_col, NEG, p_e[:, 0:Wo]),
                            p_o[:, 0:Wo]),
                p_e[:, 1:Wo + 1])
            ext = jnp.maximum(pool * sc_e + bi_e, 0.0)

            # lane-dense stores at static offsets into the flattened output row
            o_ref[0:Cmain, i * Wo:(i + 1) * Wo] = conv
            o_ref[Cmain:Cout, i * Wo:(i + 1) * Wo] = ext

        # fully unrolled: static, 8-aligned window starts and store offsets
        n_full = TH - 1 if use_halo else TH
        for i in range(n_full):
            s_even = xm_ref[0, S * i:S * i + K, :]
            s_odd = xm_ref[1, S * i:S * i + K, :]
            emit_row(i, s_even, s_odd)

        if use_halo:
            # last row of the tile: its ky=2 rows are the first rows of the
            # next slab (read through the halo view of the same input array)
            i = TH - 1
            s_even = jnp.concatenate(
                [xm_ref[0, S * i:S * i + S, :], xh_ref[0, 0:Cp, :]], axis=0)
            s_odd = jnp.concatenate(
                [xm_ref[1, S * i:S * i + S, :], xh_ref[1, 0:Cp, :]], axis=0)
            emit_row(i, s_even, s_odd)

    return kernel


def initial_block(x_nchw, w_oihw, gamma, beta, running_mean, running_var,
                  eps=1e-5, row_block=None):
    """ENet InitialBlock forward (eval-mode BN).

    x_nchw: (N, Cin, H, W); w_oihw: (Cout - 3, Cin, 3, 3).
    Returns (N, Cout, H//2, W//2) in float32.
    """
    N, Cin, H, W = x_nchw.shape
    Cmain = w_oihw.shape[0]
    Cout = Cmain + Cin
    if gamma.shape[0] != Cout:
        raise ValueError("BatchNorm size must equal (Cout-3) + Cin.")
    if H % 2 or W % 2:
        raise ValueError("InitialBlock kernel assumes even spatial dims.")
    Ho, Wo = H // 2, W // 2

    Cp = ((Cin + 3) // 4) * 4      # channel pad -> sublane-aligned windows
    S = 2 * Cp                     # merged-row stride per output row
    Hp = H + 2                     # padded image height (1 top / 1 bottom)
    M = Hp * Cp                    # merged rows total

    # ---- rows-per-step (TH) selection under a per-generation-safe VMEM budget
    def _ok(th):
        if th <= 0 or Ho % th:
            return False
        if th != Ho and (th * Wo) % 128 != 0:   # lane-aligned output blocks
            return False
        step_bytes = (2 * (2 * S * th * (Wo + 1) * 4)     # main slab, dbl-buf
                      + 2 * (Cout * th * Wo * 4))         # output, dbl-buf
        return step_bytes <= 12 * 1024 * 1024

    if row_block is not None and _ok(row_block):
        TH = row_block
    else:
        cands = [d for d in range(Ho, 0, -1) if _ok(d)]
        TH = cands[0] if cands else Ho
    T = Ho // TH
    use_halo = T > 1

    # ---- one fused input prep (the only wrapper-side full-input copy) --------
    # (N, Cin, H, W) -> (N, 2, M, Wo+1) with
    #   x_prep[n, e, h*Cp + c, k] = zero-padded pixel (chan c, padded row h,
    #                                                  padded col 2k+e)
    xf = x_nchw.astype(jnp.float32)
    xt = jnp.transpose(xf, (0, 2, 1, 3))                       # (N, H, Cin, W)
    xp = jnp.pad(xt, ((0, 0), (1, 1), (0, Cp - Cin), (1, 1)))  # (N, Hp, Cp, W+2)
    xp = xp.reshape(N, Hp, Cp, Wo + 1, 2)
    xp = jnp.transpose(xp, (0, 4, 1, 2, 3))                    # (N, 2, Hp, Cp, Wo+1)
    x_prep = xp.reshape(N, 2, M, Wo + 1)

    # ---- fused eval-mode BatchNorm;  conv-branch scale folded into weights ---
    inv_std = lax.rsqrt(running_var.astype(jnp.float32) + eps)
    scale = gamma.astype(jnp.float32) * inv_std                # (Cout,)
    bias = beta.astype(jnp.float32) - running_mean.astype(jnp.float32) * scale

    wp = jnp.pad(w_oihw.astype(jnp.float32),
                 ((0, 0), (0, Cp - Cin), (0, 0), (0, 0)))      # (Cmain, Cp, 3, 3)
    w9 = jnp.transpose(wp, (3, 0, 2, 1)).reshape(3, Cmain, 3 * Cp)
    w9 = w9 * scale[:Cmain][None, :, None]                     # fold BN scale
    scale2 = scale.reshape(Cout, 1)
    bias2 = bias.reshape(Cout, 1)

    # ---- BlockSpecs ----------------------------------------------------------
    if use_halo:
        main_spec = pl.BlockSpec((None, 2, S * TH, Wo + 1),
                                 lambda n, t: (n, 0, t, 0))
        halo_spec = pl.BlockSpec((None, 2, 8, Wo + 1),
                                 lambda n, t: (n, 0, (S * TH // 8) * (t + 1), 0))
    else:
        main_spec = pl.BlockSpec((None, 2, M, Wo + 1), lambda n, t: (n, 0, 0, 0))
        halo_spec = pl.BlockSpec((None, 2, 8, Wo + 1), lambda n, t: (n, 0, 0, 0))

    kernel = _make_kernel(TH=TH, Cin=Cin, Cp=Cp, Cmain=Cmain, Cout=Cout, Wo=Wo,
                          use_halo=use_halo)

    grid_spec = pltpu.PrefetchScalarGridSpec(
        num_scalar_prefetch=0,
        grid=(N, T),
        in_specs=[
            main_spec,
            halo_spec,
            pl.BlockSpec((3, Cmain, 3 * Cp), lambda n, t: (0, 0, 0)),
            pl.BlockSpec((Cout, 1), lambda n, t: (0, 0)),
            pl.BlockSpec((Cout, 1), lambda n, t: (0, 0)),
        ],
        # NCHW output viewed as (N, Cout, Ho*Wo): lane-dense, no transpose.
        out_specs=pl.BlockSpec((None, Cout, TH * Wo), lambda n, t: (n, 0, t)),
    )

    out_flat = pl.pallas_call(
        kernel,
        out_shape=jax.ShapeDtypeStruct((N, Cout, Ho * Wo), jnp.float32),
        grid_spec=grid_spec,
        compiler_params=pltpu.CompilerParams(
            dimension_semantics=("parallel", "parallel"),
            vmem_limit_bytes=32 * 1024 * 1024),
    )(x_prep, x_prep, w9, scale2, bias2)

    return out_flat.reshape(N, Cout, Ho, Wo)


def _reference(x, w, gamma, beta, mean, var, eps=1e-5):
    """Pure-JAX reference (NCHW), mirrors the PyTorch forward in eval mode."""
    main = lax.conv_general_dilated(
        x, w, window_strides=(2, 2), padding=((1, 1), (1, 1)),
        dimension_numbers=("NCHW", "OIHW", "NCHW"))
    ext = lax.reduce_window(
        x, -jnp.inf, lax.max, window_dimensions=(1, 1, 3, 3),
        window_strides=(1, 1, 2, 2),
        padding=((0, 0), (0, 0), (1, 1), (1, 1)))
    out = jnp.concatenate([main, ext], axis=1)
    s = (gamma / jnp.sqrt(var + eps)).reshape(1, -1, 1, 1)
    b = (beta - mean * gamma / jnp.sqrt(var + eps)).reshape(1, -1, 1, 1)
    return jnp.maximum(out * s + b, 0.0)


def _check(key, N, H, W, out_chans, row_block=None):
    in_chans = 3
    c_main = out_chans - 3
    k_x, k_w, k_g, k_b, k_m, k_v = jax.random.split(key, 6)
    x = jax.random.normal(k_x, (N, in_chans, H, W), jnp.float32)
    w = jax.random.normal(k_w, (c_main, in_chans, 3, 3), jnp.float32) * 0.1
    gamma = 1.0 + 0.1 * jax.random.normal(k_g, (out_chans,), jnp.float32)
    beta = 0.1 * jax.random.normal(k_b, (out_chans,), jnp.float32)
    mean = 0.1 * jax.random.normal(k_m, (out_chans,), jnp.float32)
    var = 1.0 + 0.1 * jax.random.uniform(k_v, (out_chans,), jnp.float32)

    out = jax.block_until_ready(
        initial_block(x, w, gamma, beta, mean, var, row_block=row_block))
    ref = _reference(x, w, gamma, beta, mean, var)
    assert out.shape == (N, out_chans, H // 2, W // 2), out.shape
    err = float(jnp.max(jnp.abs(out - ref)))
    assert jnp.allclose(out, ref, atol=1e-4, rtol=1e-4), err


if __name__ == "__main__":
    key = jax.random.PRNGKey(0)
    k0, k1, k2 = jax.random.split(key, 3)

    _check(k0, N=2, H=16, W=16, out_chans=16)                 # single-tile path
    _check(k1, N=1, H=32, W=32, out_chans=16, row_block=8)    # multi-tile + halo
    _check(k2, N=1, H=12, W=12, out_chans=16)                 # un-tiled fallback

    print("KERNEL_OK")
</pallas_src>

<mosaic_0001>
module attributes {stable_mosaic.version = 11 : i64} {
  func.func @kernel(%arg0: i32, %arg1: i32, %arg2: memref<1x2x72x9xf32, #tpu.memory_space<vmem>>, %arg3: memref<1x2x8x9xf32, #tpu.memory_space<vmem>>, %arg4: memref<3x13x12xf32, #tpu.memory_space<vmem>>, %arg5: memref<16x1xf32, #tpu.memory_space<vmem>>, %arg6: memref<16x1xf32, #tpu.memory_space<vmem>>, %arg7: memref<1x16x64xf32, #tpu.memory_space<vmem>>) attributes {dimension_semantics = [#tpu.dimension_semantics<parallel>, #tpu.dimension_semantics<parallel>], iteration_bounds = array<i64: 2, 1>, scalar_prefetch = 0 : i64, scratch_operands = 0 : i64, tpu.core_type = #tpu.core_type<tc>, window_params = [{transform_indices = @transform_0, window_bounds = array<i64: 1, 2, 72, 9>}, {transform_indices = @transform_1, window_bounds = array<i64: 1, 2, 8, 9>}, {pipeline_mode = #tpu.pipeline_mode<synchronous>, transform_indices = @transform_2, window_bounds = array<i64: 3, 13, 12>}, {pipeline_mode = #tpu.pipeline_mode<synchronous>, transform_indices = @transform_3, window_bounds = array<i64: 16, 1>}, {pipeline_mode = #tpu.pipeline_mode<synchronous>, transform_indices = @transform_4, window_bounds = array<i64: 16, 1>}, {transform_indices = @transform_5, window_bounds = array<i64: 1, 16, 64>}]} {
    %c0 = arith.constant 0 : index
    %c0_0 = arith.constant 0 : index
    %c0_1 = arith.constant 0 : index
    %0 = vector.load %arg4[%c0, %c0_0, %c0_1] : memref<3x13x12xf32, #tpu.memory_space<vmem>>, vector<1x13x12xf32>
    %1 = vector.shape_cast %0 : vector<1x13x12xf32> to vector<13x12xf32>
    %c1 = arith.constant 1 : index
    %c0_2 = arith.constant 0 : index
    %c0_3 = arith.constant 0 : index
    %2 = vector.load %arg4[%c1, %c0_2, %c0_3] : memref<3x13x12xf32, #tpu.memory_space<vmem>>, vector<1x13x12xf32>
    %3 = vector.shape_cast %2 : vector<1x13x12xf32> to vector<13x12xf32>
    %c2 = arith.constant 2 : index
    %c0_4 = arith.constant 0 : index
    %c0_5 = arith.constant 0 : index
    %4 = vector.load %arg4[%c2, %c0_4, %c0_5] : memref<3x13x12xf32, #tpu.memory_space<vmem>>, vector<1x13x12xf32>
    %5 = vector.shape_cast %4 : vector<1x13x12xf32> to vector<13x12xf32>
    %c0_6 = arith.constant 0 : index
    %c0_7 = arith.constant 0 : index
    %6 = vector.load %arg6[%c0_6, %c0_7] : memref<16x1xf32, #tpu.memory_space<vmem>>, vector<13x1xf32>
    %7 = vector.shape_cast %6 : vector<13x1xf32> to vector<13x1xf32>
    %8 = vector.broadcast %7 : vector<13x1xf32> to vector<13x8xf32>
    %c13 = arith.constant 13 : index
    %c0_8 = arith.constant 0 : index
    %9 = vector.load %arg5[%c13, %c0_8] : memref<16x1xf32, #tpu.memory_space<vmem>>, vector<3x1xf32>
    %10 = vector.shape_cast %9 : vector<3x1xf32> to vector<3x1xf32>
    %11 = vector.broadcast %10 : vector<3x1xf32> to vector<3x8xf32>
    %c13_9 = arith.constant 13 : index
    %c0_10 = arith.constant 0 : index
    %12 = vector.load %arg6[%c13_9, %c0_10] : memref<16x1xf32, #tpu.memory_space<vmem>>, vector<3x1xf32>
    %13 = vector.shape_cast %12 : vector<3x1xf32> to vector<3x1xf32>
    %14 = vector.broadcast %13 : vector<3x1xf32> to vector<3x8xf32>
    %15 = tpu.iota {dimensions = array<i32: 1>} : vector<3x8xi32>
    %c0_i32 = arith.constant 0 : i32
    %16 = vector.broadcast %c0_i32 : i32 to vector<3x8xi32>
    %17 = arith.cmpi eq, %15, %16 : vector<3x8xi32>
    %c0_11 = arith.constant 0 : index
    %c0_12 = arith.constant 0 : index
    %c0_13 = arith.constant 0 : index
    %c0_14 = arith.constant 0 : index
    %18 = vector.load %arg2[%c0_11, %c0_12, %c0_13, %c0_14] : memref<1x2x72x9xf32, #tpu.memory_space<vmem>>, vector<1x1x12x9xf32>
    %19 = vector.shape_cast %18 : vector<1x1x12x9xf32> to vector<12x9xf32>
    %c0_15 = arith.constant 0 : index
    %c1_16 = arith.constant 1 : index
    %c0_17 = arith.constant 0 : index
    %c0_18 = arith.constant 0 : index
    %20 = vector.load %arg2[%c0_15, %c1_16, %c0_17, %c0_18] : memref<1x2x72x9xf32, #tpu.memory_space<vmem>>, vector<1x1x12x9xf32>
    %21 = vector.shape_cast %20 : vector<1x1x12x9xf32> to vector<12x9xf32>
    %22 = vector.extract_strided_slice %19 {offsets = [0, 0], sizes = [12, 8], strides = [1, 1]} : vector<12x9xf32> to vector<12x8xf32>
    %cst = arith.constant dense<0.000000e+00> : vector<13x8xf32>
    %23 = tpu.matmul %1, %22, %cst {dimension_numbers = #tpu.dot_dimension_numbers<[1], [0], [0], [1], [0, 0, 1, 1], [], []>} : vector<13x12xf32>, vector<12x8xf32>, vector<13x8xf32> -> vector<13x8xf32>
    %24 = vector.extract_strided_slice %21 {offsets = [0, 0], sizes = [12, 8], strides = [1, 1]} : vector<12x9xf32> to vector<12x8xf32>
    %cst_19 = arith.constant dense<0.000000e+00> : vector<13x8xf32>
    %25 = tpu.matmul %3, %24, %cst_19 {dimension_numbers = #tpu.dot_dimension_numbers<[1], [0], [0], [1], [0, 0, 1, 1], [], []>} : vector<13x12xf32>, vector<12x8xf32>, vector<13x8xf32> -> vector<13x8xf32>
    %26 = arith.addf %23, %25 : vector<13x8xf32>
    %27 = vector.extract_strided_slice %19 {offsets = [0, 1], sizes = [12, 8], strides = [1, 1]} : vector<12x9xf32> to vector<12x8xf32>
    %cst_20 = arith.constant dense<0.000000e+00> : vector<13x8xf32>
    %28 = tpu.matmul %5, %27, %cst_20 {dimension_numbers = #tpu.dot_dimension_numbers<[1], [0], [0], [1], [0, 0, 1, 1], [], []>} : vector<13x12xf32>, vector<12x8xf32>, vector<13x8xf32> -> vector<13x8xf32>
    %29 = arith.addf %26, %28 : vector<13x8xf32>
    %30 = arith.addf %29, %8 : vector<13x8xf32>
    %cst_21 = arith.constant 0.000000e+00 : f32
    %31 = vector.broadcast %cst_21 : f32 to vector<13x8xf32>
    %32 = arith.maximumf %30, %31 : vector<13x8xf32>
    %33 = vector.extract_strided_slice %19 {offsets = [0, 0], sizes = [3, 9], strides = [1, 1]} : vector<12x9xf32> to vector<3x9xf32>
    %34 = vector.extract_strided_slice %21 {offsets = [0, 0], sizes = [3, 9], strides = [1, 1]} : vector<12x9xf32> to vector<3x9xf32>
    %c0_i32_22 = arith.constant 0 : i32
    %35 = arith.cmpi eq, %arg1, %c0_i32_22 : i32
    %cst_23 = arith.constant 0xFF800000 : f32
    %36 = vector.broadcast %cst_23 : f32 to vector<3x9xf32>
    %37 = arith.select %35, %36, %33 : vector<3x9xf32>
    %c0_i32_24 = arith.constant 0 : i32
    %38 = arith.cmpi eq, %arg1, %c0_i32_24 : i32
    %cst_25 = arith.constant 0xFF800000 : f32
    %39 = vector.broadcast %cst_25 : f32 to vector<3x9xf32>
    %40 = arith.select %38, %39, %34 : vector<3x9xf32>
    %41 = vector.extract_strided_slice %19 {offsets = [4, 0], sizes = [3, 9], strides = [1, 1]} : vector<12x9xf32> to vector<3x9xf32>
    %42 = arith.maximumf %37, %41 : vector<3x9xf32>
    %43 = vector.extract_strided_slice %19 {offsets = [8, 0], sizes = [3, 9], strides = [1, 1]} : vector<12x9xf32> to vector<3x9xf32>
    %44 = arith.maximumf %42, %43 : vector<3x9xf32>
    %45 = vector.extract_strided_slice %21 {offsets = [4, 0], sizes = [3, 9], strides = [1, 1]} : vector<12x9xf32> to vector<3x9xf32>
    %46 = arith.maximumf %40, %45 : vector<3x9xf32>
    %47 = vector.extract_strided_slice %21 {offsets = [8, 0], sizes = [3, 9], strides = [1, 1]} : vector<12x9xf32> to vector<3x9xf32>
    %48 = arith.maximumf %46, %47 : vector<3x9xf32>
    %49 = vector.extract_strided_slice %44 {offsets = [0, 0], sizes = [3, 8], strides = [1, 1]} : vector<3x9xf32> to vector<3x8xf32>
    %cst_26 = arith.constant 0xFF800000 : f32
    %50 = vector.broadcast %cst_26 : f32 to vector<3x8xf32>
    %51 = arith.select %17, %50, %49 : vector<3x8xi1>, vector<3x8xf32>
    %52 = vector.extract_strided_slice %48 {offsets = [0, 0], sizes = [3, 8], strides = [1, 1]} : vector<3x9xf32> to vector<3x8xf32>
    %53 = arith.maximumf %51, %52 : vector<3x8xf32>
    %54 = vector.extract_strided_slice %44 {offsets = [0, 1], sizes = [3, 8], strides = [1, 1]} : vector<3x9xf32> to vector<3x8xf32>
    %55 = arith.maximumf %53, %54 : vector<3x8xf32>
    %56 = arith.mulf %55, %11 : vector<3x8xf32>
    %57 = arith.addf %56, %14 : vector<3x8xf32>
    %cst_27 = arith.constant 0.000000e+00 : f32
    %58 = vector.broadcast %cst_27 : f32 to vector<3x8xf32>
    %59 = arith.maximumf %57, %58 : vector<3x8xf32>
    %c0_28 = arith.constant 0 : index
    %c0_29 = arith.constant 0 : index
    %c0_30 = arith.constant 0 : index
    %60 = vector.load %arg7[%c0_28, %c0_29, %c0_30] : memref<1x16x64xf32, #tpu.memory_space<vmem>>, vector<1x13x8xf32>
    %61 = vector.shape_cast %60 : vector<1x13x8xf32> to vector<13x8xf32>
    %62 = vector.shape_cast %32 : vector<13x8xf32> to vector<1x13x8xf32>
    tpu.vector_store %arg7[%c0_28, %c0_29, %c0_30], %62 {strides = array<i32>} : memref<1x16x64xf32, #tpu.memory_space<vmem>>, vector<1x13x8xf32>,
    %c0_31 = arith.constant 0 : index
    %c13_32 = arith.constant 13 : index
    %c0_33 = arith.constant 0 : index
    %63 = vector.load %arg7[%c0_31, %c13_32, %c0_33] : memref<1x16x64xf32, #tpu.memory_space<vmem>>, vector<1x3x8xf32>
    %64 = vector.shape_cast %63 : vector<1x3x8xf32> to vector<3x8xf32>
    %65 = vector.shape_cast %59 : vector<3x8xf32> to vector<1x3x8xf32>
    tpu.vector_store %arg7[%c0_31, %c13_32, %c0_33], %65 {strides = array<i32>} : memref<1x16x64xf32, #tpu.memory_space<vmem>>, vector<1x3x8xf32>,
    %c0_34 = arith.constant 0 : index
    %c0_35 = arith.constant 0 : index
    %c8 = arith.constant 8 : index
    %c0_36 = arith.constant 0 : index
    %66 = vector.load %arg2[%c0_34, %c0_35, %c8, %c0_36] : memref<1x2x72x9xf32, #tpu.memory_space<vmem>>, vector<1x1x12x9xf32>
    %67 = vector.shape_cast %66 : vector<1x1x12x9xf32> to vector<12x9xf32>
    %c0_37 = arith.constant 0 : index
    %c1_38 = arith.constant 1 : index
    %c8_39 = arith.constant 8 : index
    %c0_40 = arith.constant 0 : index
    %68 = vector.load %arg2[%c0_37, %c1_38, %c8_39, %c0_40] : memref<1x2x72x9xf32, #tpu.memory_space<vmem>>, vector<1x1x12x9xf32>
    %69 = vector.shape_cast %68 : vector<1x1x12x9xf32> to vector<12x9xf32>
    %70 = vector.extract_strided_slice %67 {offsets = [0, 0], sizes = [12, 8], strides = [1, 1]} : vector<12x9xf32> to vector<12x8xf32>
    %cst_41 = arith.constant dense<0.000000e+00> : vector<13x8xf32>
    %71 = tpu.matmul %1, %70, %cst_41 {dimension_numbers = #tpu.dot_dimension_numbers<[1], [0], [0], [1], [0, 0, 1, 1], [], []>} : vector<13x12xf32>, vector<12x8xf32>, vector<13x8xf32> -> vector<13x8xf32>
    %72 = vector.extract_strided_slice %69 {offsets = [0, 0], sizes = [12, 8], strides = [1, 1]} : vector<12x9xf32> to vector<12x8xf32>
    %cst_42 = arith.constant dense<0.000000e+00> : vector<13x8xf32>
    %73 = tpu.matmul %3, %72, %cst_42 {dimension_numbers = #tpu.dot_dimension_numbers<[1], [0], [0], [1], [0, 0, 1, 1], [], []>} : vector<13x12xf32>, vector<12x8xf32>, vector<13x8xf32> -> vector<13x8xf32>
    %74 = arith.addf %71, %73 : vector<13x8xf32>
    %75 = vector.extract_strided_slice %67 {offsets = [0, 1], sizes = [12, 8], strides = [1, 1]} : vector<12x9xf32> to vector<12x8xf32>
    %cst_43 = arith.constant dense<0.000000e+00> : vector<13x8xf32>
    %76 = tpu.matmul %5, %75, %cst_43 {dimension_numbers = #tpu.dot_dimension_numbers<[1], [0], [0], [1], [0, 0, 1, 1], [], []>} : vector<13x12xf32>, vector<12x8xf32>, vector<13x8xf32> -> vector<13x8xf32>
    %77 = arith.addf %74, %76 : vector<13x8xf32>
    %78 = arith.addf %77, %8 : vector<13x8xf32>
    %cst_44 = arith.constant 0.000000e+00 : f32
    %79 = vector.broadcast %cst_44 : f32 to vector<13x8xf32>
    %80 = arith.maximumf %78, %79 : vector<13x8xf32>
    %81 = vector.extract_strided_slice %67 {offsets = [0, 0], sizes = [3, 9], strides = [1, 1]} : vector<12x9xf32> to vector<3x9xf32>
    %82 = vector.extract_strided_slice %69 {offsets = [0, 0], sizes = [3, 9], strides = [1, 1]} : vector<12x9xf32> to vector<3x9xf32>
    %83 = vector.extract_strided_slice %67 {offsets = [4, 0], sizes = [3, 9], strides = [1, 1]} : vector<12x9xf32> to vector<3x9xf32>
    %84 = arith.maximumf %81, %83 : vector<3x9xf32>
    %85 = vector.extract_strided_slice %67 {offsets = [8, 0], sizes = [3, 9], strides = [1, 1]} : vector<12x9xf32> to vector<3x9xf32>
    %86 = arith.maximumf %84, %85 : vector<3x9xf32>
    %87 = vector.extract_strided_slice %69 {offsets = [4, 0], sizes = [3, 9], strides = [1, 1]} : vector<12x9xf32> to vector<3x9xf32>
    %88 = arith.maximumf %82, %87 : vector<3x9xf32>
    %89 = vector.extract_strided_slice %69 {offsets = [8, 0], sizes = [3, 9], strides = [1, 1]} : vector<12x9xf32> to vector<3x9xf32>
    %90 = arith.maximumf %88, %89 : vector<3x9xf32>
    %91 = vector.extract_strided_slice %86 {offsets = [0, 0], sizes = [3, 8], strides = [1, 1]} : vector<3x9xf32> to vector<3x8xf32>
    %cst_45 = arith.constant 0xFF800000 : f32
    %92 = vector.broadcast %cst_45 : f32 to vector<3x8xf32>
    %93 = arith.select %17, %92, %91 : vector<3x8xi1>, vector<3x8xf32>
    %94 = vector.extract_strided_slice %90 {offsets = [0, 0], sizes = [3, 8], strides = [1, 1]} : vector<3x9xf32> to vector<3x8xf32>
    %95 = arith.maximumf %93, %94 : vector<3x8xf32>
    %96 = vector.extract_strided_slice %86 {offsets = [0, 1], sizes = [3, 8], strides = [1, 1]} : vector<3x9xf32> to vector<3x8xf32>
    %97 = arith.maximumf %95, %96 : vector<3x8xf32>
    %98 = arith.mulf %97, %11 : vector<3x8xf32>
    %99 = arith.addf %98, %14 : vector<3x8xf32>
    %cst_46 = arith.constant 0.000000e+00 : f32
    %100 = vector.broadcast %cst_46 : f32 to vector<3x8xf32>
    %101 = arith.maximumf %99, %100 : vector<3x8xf32>
    %c0_47 = arith.constant 0 : index
    %c0_48 = arith.constant 0 : index
    %c8_49 = arith.constant 8 : index
    %102 = vector.load %arg7[%c0_47, %c0_48, %c8_49] : memref<1x16x64xf32, #tpu.memory_space<vmem>>, vector<1x13x8xf32>
    %103 = vector.shape_cast %102 : vector<1x13x8xf32> to vector<13x8xf32>
    %104 = vector.shape_cast %80 : vector<13x8xf32> to vector<1x13x8xf32>
    tpu.vector_store %arg7[%c0_47, %c0_48, %c8_49], %104 {strides = array<i32>} : memref<1x16x64xf32, #tpu.memory_space<vmem>>, vector<1x13x8xf32>,
    %c0_50 = arith.constant 0 : index
    %c13_51 = arith.constant 13 : index
    %c8_52 = arith.constant 8 : index
    %105 = vector.load %arg7[%c0_50, %c13_51, %c8_52] : memref<1x16x64xf32, #tpu.memory_space<vmem>>, vector<1x3x8xf32>
    %106 = vector.shape_cast %105 : vector<1x3x8xf32> to vector<3x8xf32>
    %107 = vector.shape_cast %101 : vector<3x8xf32> to vector<1x3x8xf32>
    tpu.vector_store %arg7[%c0_50, %c13_51, %c8_52], %107 {strides = array<i32>} : memref<1x16x64xf32, #tpu.memory_space<vmem>>, vector<1x3x8xf32>,
    %c0_53 = arith.constant 0 : index
    %c0_54 = arith.constant 0 : index
    %c16 = arith.constant 16 : index
    %c0_55 = arith.constant 0 : index
    %108 = vector.load %arg2[%c0_53, %c0_54, %c16, %c0_55] : memref<1x2x72x9xf32, #tpu.memory_space<vmem>>, vector<1x1x12x9xf32>
    %109 = vector.shape_cast %108 : vector<1x1x12x9xf32> to vector<12x9xf32>
    %c0_56 = arith.constant 0 : index
    %c1_57 = arith.constant 1 : index
    %c16_58 = arith.constant 16 : index
    %c0_59 = arith.constant 0 : index
    %110 = vector.load %arg2[%c0_56, %c1_57, %c16_58, %c0_59] : memref<1x2x72x9xf32, #tpu.memory_space<vmem>>, vector<1x1x12x9xf32>
    %111 = vector.shape_cast %110 : vector<1x1x12x9xf32> to vector<12x9xf32>
    %112 = vector.extract_strided_slice %109 {offsets = [0, 0], sizes = [12, 8], strides = [1, 1]} : vector<12x9xf32> to vector<12x8xf32>
    %cst_60 = arith.constant dense<0.000000e+00> : vector<13x8xf32>
    %113 = tpu.matmul %1, %112, %cst_60 {dimension_numbers = #tpu.dot_dimension_numbers<[1], [0], [0], [1], [0, 0, 1, 1], [], []>} : vector<13x12xf32>, vector<12x8xf32>, vector<13x8xf32> -> vector<13x8xf32>
    %114 = vector.extract_strided_slice %111 {offsets = [0, 0], sizes = [12, 8], strides = [1, 1]} : vector<12x9xf32> to vector<12x8xf32>
    %cst_61 = arith.constant dense<0.000000e+00> : vector<13x8xf32>
    %115 = tpu.matmul %3, %114, %cst_61 {dimension_numbers = #tpu.dot_dimension_numbers<[1], [0], [0], [1], [0, 0, 1, 1], [], []>} : vector<13x12xf32>, vector<12x8xf32>, vector<13x8xf32> -> vector<13x8xf32>
    %116 = arith.addf %113, %115 : vector<13x8xf32>
    %117 = vector.extract_strided_slice %109 {offsets = [0, 1], sizes = [12, 8], strides = [1, 1]} : vector<12x9xf32> to vector<12x8xf32>
    %cst_62 = arith.constant dense<0.000000e+00> : vector<13x8xf32>
    %118 = tpu.matmul %5, %117, %cst_62 {dimension_numbers = #tpu.dot_dimension_numbers<[1], [0], [0], [1], [0, 0, 1, 1], [], []>} : vector<13x12xf32>, vector<12x8xf32>, vector<13x8xf32> -> vector<13x8xf32>
    %119 = arith.addf %116, %118 : vector<13x8xf32>
    %120 = arith.addf %119, %8 : vector<13x8xf32>
    %cst_63 = arith.constant 0.000000e+00 : f32
    %121 = vector.broadcast %cst_63 : f32 to vector<13x8xf32>
    %122 = arith.maximumf %120, %121 : vector<13x8xf32>
    %123 = vector.extract_strided_slice %109 {offsets = [0, 0], sizes = [3, 9], strides = [1, 1]} : vector<12x9xf32> to vector<3x9xf32>
    %124 = vector.extract_strided_slice %111 {offsets = [0, 0], sizes = [3, 9], strides = [1, 1]} : vector<12x9xf32> to vector<3x9xf32>
    %125 = vector.extract_strided_slice %109 {offsets = [4, 0], sizes = [3, 9], strides = [1, 1]} : vector<12x9xf32> to vector<3x9xf32>
    %126 = arith.maximumf %123, %125 : vector<3x9xf32>
    %127 = vector.extract_strided_slice %109 {offsets = [8, 0], sizes = [3, 9], strides = [1, 1]} : vector<12x9xf32> to vector<3x9xf32>
    %128 = arith.maximumf %126, %127 : vector<3x9xf32>
    %129 = vector.extract_strided_slice %111 {offsets = [4, 0], sizes = [3, 9], strides = [1, 1]} : vector<12x9xf32> to vector<3x9xf32>
    %130 = arith.maximumf %124, %129 : vector<3x9xf32>
    %131 = vector.extract_strided_slice %111 {offsets = [8, 0], sizes = [3, 9], strides = [1, 1]} : vector<12x9xf32> to vector<3x9xf32>
    %132 = arith.maximumf %130, %131 : vector<3x9xf32>
    %133 = vector.extract_strided_slice %128 {offsets = [0, 0], sizes = [3, 8], strides = [1, 1]} : vector<3x9xf32> to vector<3x8xf32>
    %cst_64 = arith.constant 0xFF800000 : f32
    %134 = vector.broadcast %cst_64 : f32 to vector<3x8xf32>
    %135 = arith.select %17, %134, %133 : vector<3x8xi1>, vector<3x8xf32>
    %136 = vector.extract_strided_slice %132 {offsets = [0, 0], sizes = [3, 8], strides = [1, 1]} : vector<3x9xf32> to vector<3x8xf32>
    %137 = arith.maximumf %135, %136 : vector<3x8xf32>
    %138 = vector.extract_strided_slice %128 {offsets = [0, 1], sizes = [3, 8], strides = [1, 1]} : vector<3x9xf32> to vector<3x8xf32>
    %139 = arith.maximumf %137, %138 : vector<3x8xf32>
    %140 = arith.mulf %139, %11 : vector<3x8xf32>
    %141 = arith.addf %140, %14 : vector<3x8xf32>
    %cst_65 = arith.constant 0.000000e+00 : f32
    %142 = vector.broadcast %cst_65 : f32 to vector<3x8xf32>
    %143 = arith.maximumf %141, %142 : vector<3x8xf32>
    %c0_66 = arith.constant 0 : index
    %c0_67 = arith.constant 0 : index
    %c16_68 = arith.constant 16 : index
    %144 = vector.load %arg7[%c0_66, %c0_67, %c16_68] : memref<1x16x64xf32, #tpu.memory_space<vmem>>, vector<1x13x8xf32>
    %145 = vector.shape_cast %144 : vector<1x13x8xf32> to vector<13x8xf32>
    %146 = vector.shape_cast %122 : vector<13x8xf32> to vector<1x13x8xf32>
    tpu.vector_store %arg7[%c0_66, %c0_67, %c16_68], %146 {strides = array<i32>} : memref<1x16x64xf32, #tpu.memory_space<vmem>>, vector<1x13x8xf32>,
    %c0_69 = arith.constant 0 : index
    %c13_70 = arith.constant 13 : index
    %c16_71 = arith.constant 16 : index
    %147 = vector.load %arg7[%c0_69, %c13_70, %c16_71] : memref<1x16x64xf32, #tpu.memory_space<vmem>>, vector<1x3x8xf32>
    %148 = vector.shape_cast %147 : vector<1x3x8xf32> to vector<3x8xf32>
    %149 = vector.shape_cast %143 : vector<3x8xf32> to vector<1x3x8xf32>
    tpu.vector_store %arg7[%c0_69, %c13_70, %c16_71], %149 {strides = array<i32>} : memref<1x16x64xf32, #tpu.memory_space<vmem>>, vector<1x3x8xf32>,
    %c0_72 = arith.constant 0 : index
    %c0_73 = arith.constant 0 : index
    %c24 = arith.constant 24 : index
    %c0_74 = arith.constant 0 : index
    %150 = vector.load %arg2[%c0_72, %c0_73, %c24, %c0_74] : memref<1x2x72x9xf32, #tpu.memory_space<vmem>>, vector<1x1x12x9xf32>
    %151 = vector.shape_cast %150 : vector<1x1x12x9xf32> to vector<12x9xf32>
    %c0_75 = arith.constant 0 : index
    %c1_76 = arith.constant 1 : index
    %c24_77 = arith.constant 24 : index
    %c0_78 = arith.constant 0 : index
    %152 = vector.load %arg2[%c0_75, %c1_76, %c24_77, %c0_78] : memref<1x2x72x9xf32, #tpu.memory_space<vmem>>, vector<1x1x12x9xf32>
    %153 = vector.shape_cast %152 : vector<1x1x12x9xf32> to vector<12x9xf32>
    %154 = vector.extract_strided_slice %151 {offsets = [0, 0], sizes = [12, 8], strides = [1, 1]} : vector<12x9xf32> to vector<12x8xf32>
    %cst_79 = arith.constant dense<0.000000e+00> : vector<13x8xf32>
    %155 = tpu.matmul %1, %154, %cst_79 {dimension_numbers = #tpu.dot_dimension_numbers<[1], [0], [0], [1], [0, 0, 1, 1], [], []>} : vector<13x12xf32>, vector<12x8xf32>, vector<13x8xf32> -> vector<13x8xf32>
    %156 = vector.extract_strided_slice %153 {offsets = [0, 0], sizes = [12, 8], strides = [1, 1]} : vector<12x9xf32> to vector<12x8xf32>
    %cst_80 = arith.constant dense<0.000000e+00> : vector<13x8xf32>
    %157 = tpu.matmul %3, %156, %cst_80 {dimension_numbers = #tpu.dot_dimension_numbers<[1], [0], [0], [1], [0, 0, 1, 1], [], []>} : vector<13x12xf32>, vector<12x8xf32>, vector<13x8xf32> -> vector<13x8xf32>
    %158 = arith.addf %155, %157 : vector<13x8xf32>
    %159 = vector.extract_strided_slice %151 {offsets = [0, 1], sizes = [12, 8], strides = [1, 1]} : vector<12x9xf32> to vector<12x8xf32>
    %cst_81 = arith.constant dense<0.000000e+00> : vector<13x8xf32>
    %160 = tpu.matmul %5, %159, %cst_81 {dimension_numbers = #tpu.dot_dimension_numbers<[1], [0], [0], [1], [0, 0, 1, 1], [], []>} : vector<13x12xf32>, vector<12x8xf32>, vector<13x8xf32> -> vector<13x8xf32>
    %161 = arith.addf %158, %160 : vector<13x8xf32>
    %162 = arith.addf %161, %8 : vector<13x8xf32>
    %cst_82 = arith.constant 0.000000e+00 : f32
    %163 = vector.broadcast %cst_82 : f32 to vector<13x8xf32>
    %164 = arith.maximumf %162, %163 : vector<13x8xf32>
    %165 = vector.extract_strided_slice %151 {offsets = [0, 0], sizes = [3, 9], strides = [1, 1]} : vector<12x9xf32> to vector<3x9xf32>
    %166 = vector.extract_strided_slice %153 {offsets = [0, 0], sizes = [3, 9], strides = [1, 1]} : vector<12x9xf32> to vector<3x9xf32>
    %167 = vector.extract_strided_slice %151 {offsets = [4, 0], sizes = [3, 9], strides = [1, 1]} : vector<12x9xf32> to vector<3x9xf32>
    %168 = arith.maximumf %165, %167 : vector<3x9xf32>
    %169 = vector.extract_strided_slice %151 {offsets = [8, 0], sizes = [3, 9], strides = [1, 1]} : vector<12x9xf32> to vector<3x9xf32>
    %170 = arith.maximumf %168, %169 : vector<3x9xf32>
    %171 = vector.extract_strided_slice %153 {offsets = [4, 0], sizes = [3, 9], strides = [1, 1]} : vector<12x9xf32> to vector<3x9xf32>
    %172 = arith.maximumf %166, %171 : vector<3x9xf32>
    %173 = vector.extract_strided_slice %153 {offsets = [8, 0], sizes = [3, 9], strides = [1, 1]} : vector<12x9xf32> to vector<3x9xf32>
    %174 = arith.maximumf %172, %173 : vector<3x9xf32>
    %175 = vector.extract_strided_slice %170 {offsets = [0, 0], sizes = [3, 8], strides = [1, 1]} : vector<3x9xf32> to vector<3x8xf32>
    %cst_83 = arith.constant 0xFF800000 : f32
    %176 = vector.broadcast %cst_83 : f32 to vector<3x8xf32>
    %177 = arith.select %17, %176, %175 : vector<3x8xi1>, vector<3x8xf32>
    %178 = vector.extract_strided_slice %174 {offsets = [0, 0], sizes = [3, 8], strides = [1, 1]} : vector<3x9xf32> to vector<3x8xf32>
    %179 = arith.maximumf %177, %178 : vector<3x8xf32>
    %180 = vector.extract_strided_slice %170 {offsets = [0, 1], sizes = [3, 8], strides = [1, 1]} : vector<3x9xf32> to vector<3x8xf32>
    %181 = arith.maximumf %179, %180 : vector<3x8xf32>
    %182 = arith.mulf %181, %11 : vector<3x8xf32>
    %183 = arith.addf %182, %14 : vector<3x8xf32>
    %cst_84 = arith.constant 0.000000e+00 : f32
    %184 = vector.broadcast %cst_84 : f32 to vector<3x8xf32>
    %185 = arith.maximumf %183, %184 : vector<3x8xf32>
    %c0_85 = arith.constant 0 : index
    %c0_86 = arith.constant 0 : index
    %c24_87 = arith.constant 24 : index
    %186 = vector.load %arg7[%c0_85, %c0_86, %c24_87] : memref<1x16x64xf32, #tpu.memory_space<vmem>>, vector<1x13x8xf32>
    %187 = vector.shape_cast %186 : vector<1x13x8xf32> to vector<13x8xf32>
    %188 = vector.shape_cast %164 : vector<13x8xf32> to vector<1x13x8xf32>
    tpu.vector_store %arg7[%c0_85, %c0_86, %c24_87], %188 {strides = array<i32>} : memref<1x16x64xf32, #tpu.memory_space<vmem>>, vector<1x13x8xf32>,
    %c0_88 = arith.constant 0 : index
    %c13_89 = arith.constant 13 : index
    %c24_90 = arith.constant 24 : index
    %189 = vector.load %arg7[%c0_88, %c13_89, %c24_90] : memref<1x16x64xf32, #tpu.memory_space<vmem>>, vector<1x3x8xf32>
    %190 = vector.shape_cast %189 : vector<1x3x8xf32> to vector<3x8xf32>
    %191 = vector.shape_cast %185 : vector<3x8xf32> to vector<1x3x8xf32>
    tpu.vector_store %arg7[%c0_88, %c13_89, %c24_90], %191 {strides = array<i32>} : memref<1x16x64xf32, #tpu.memory_space<vmem>>, vector<1x3x8xf32>,
    %c0_91 = arith.constant 0 : index
    %c0_92 = arith.constant 0 : index
    %c32 = arith.constant 32 : index
    %c0_93 = arith.constant 0 : index
    %192 = vector.load %arg2[%c0_91, %c0_92, %c32, %c0_93] : memref<1x2x72x9xf32, #tpu.memory_space<vmem>>, vector<1x1x12x9xf32>
    %193 = vector.shape_cast %192 : vector<1x1x12x9xf32> to vector<12x9xf32>
    %c0_94 = arith.constant 0 : index
    %c1_95 = arith.constant 1 : index
    %c32_96 = arith.constant 32 : index
    %c0_97 = arith.constant 0 : index
    %194 = vector.load %arg2[%c0_94, %c1_95, %c32_96, %c0_97] : memref<1x2x72x9xf32, #tpu.memory_space<vmem>>, vector<1x1x12x9xf32>
    %195 = vector.shape_cast %194 : vector<1x1x12x9xf32> to vector<12x9xf32>
    %196 = vector.extract_strided_slice %193 {offsets = [0, 0], sizes = [12, 8], strides = [1, 1]} : vector<12x9xf32> to vector<12x8xf32>
    %cst_98 = arith.constant dense<0.000000e+00> : vector<13x8xf32>
    %197 = tpu.matmul %1, %196, %cst_98 {dimension_numbers = #tpu.dot_dimension_numbers<[1], [0], [0], [1], [0, 0, 1, 1], [], []>} : vector<13x12xf32>, vector<12x8xf32>, vector<13x8xf32> -> vector<13x8xf32>
    %198 = vector.extract_strided_slice %195 {offsets = [0, 0], sizes = [12, 8], strides = [1, 1]} : vector<12x9xf32> to vector<12x8xf32>
    %cst_99 = arith.constant dense<0.000000e+00> : vector<13x8xf32>
    %199 = tpu.matmul %3, %198, %cst_99 {dimension_numbers = #tpu.dot_dimension_numbers<[1], [0], [0], [1], [0, 0, 1, 1], [], []>} : vector<13x12xf32>, vector<12x8xf32>, vector<13x8xf32> -> vector<13x8xf32>
    %200 = arith.addf %197, %199 : vector<13x8xf32>
    %201 = vector.extract_strided_slice %193 {offsets = [0, 1], sizes = [12, 8], strides = [1, 1]} : vector<12x9xf32> to vector<12x8xf32>
    %cst_100 = arith.constant dense<0.000000e+00> : vector<13x8xf32>
    %202 = tpu.matmul %5, %201, %cst_100 {dimension_numbers = #tpu.dot_dimension_numbers<[1], [0], [0], [1], [0, 0, 1, 1], [], []>} : vector<13x12xf32>, vector<12x8xf32>, vector<13x8xf32> -> vector<13x8xf32>
    %203 = arith.addf %200, %202 : vector<13x8xf32>
    %204 = arith.addf %203, %8 : vector<13x8xf32>
    %cst_101 = arith.constant 0.000000e+00 : f32
    %205 = vector.broadcast %cst_101 : f32 to vector<13x8xf32>
    %206 = arith.maximumf %204, %205 : vector<13x8xf32>
    %207 = vector.extract_strided_slice %193 {offsets = [0, 0], sizes = [3, 9], strides = [1, 1]} : vector<12x9xf32> to vector<3x9xf32>
    %208 = vector.extract_strided_slice %195 {offsets = [0, 0], sizes = [3, 9], strides = [1, 1]} : vector<12x9xf32> to vector<3x9xf32>
    %209 = vector.extract_strided_slice %193 {offsets = [4, 0], sizes = [3, 9], strides = [1, 1]} : vector<12x9xf32> to vector<3x9xf32>
    %210 = arith.maximumf %207, %209 : vector<3x9xf32>
    %211 = vector.extract_strided_slice %193 {offsets = [8, 0], sizes = [3, 9], strides = [1, 1]} : vector<12x9xf32> to vector<3x9xf32>
    %212 = arith.maximumf %210, %211 : vector<3x9xf32>
    %213 = vector.extract_strided_slice %195 {offsets = [4, 0], sizes = [3, 9], strides = [1, 1]} : vector<12x9xf32> to vector<3x9xf32>
    %214 = arith.maximumf %208, %213 : vector<3x9xf32>
    %215 = vector.extract_strided_slice %195 {offsets = [8, 0], sizes = [3, 9], strides = [1, 1]} : vector<12x9xf32> to vector<3x9xf32>
    %216 = arith.maximumf %214, %215 : vector<3x9xf32>
    %217 = vector.extract_strided_slice %212 {offsets = [0, 0], sizes = [3, 8], strides = [1, 1]} : vector<3x9xf32> to vector<3x8xf32>
    %cst_102 = arith.constant 0xFF800000 : f32
    %218 = vector.broadcast %cst_102 : f32 to vector<3x8xf32>
    %219 = arith.select %17, %218, %217 : vector<3x8xi1>, vector<3x8xf32>
    %220 = vector.extract_strided_slice %216 {offsets = [0, 0], sizes = [3, 8], strides = [1, 1]} : vector<3x9xf32> to vector<3x8xf32>
    %221 = arith.maximumf %219, %220 : vector<3x8xf32>
    %222 = vector.extract_strided_slice %212 {offsets = [0, 1], sizes = [3, 8], strides = [1, 1]} : vector<3x9xf32> to vector<3x8xf32>
    %223 = arith.maximumf %221, %222 : vector<3x8xf32>
    %224 = arith.mulf %223, %11 : vector<3x8xf32>
    %225 = arith.addf %224, %14 : vector<3x8xf32>
    %cst_103 = arith.constant 0.000000e+00 : f32
    %226 = vector.broadcast %cst_103 : f32 to vector<3x8xf32>
    %227 = arith.maximumf %225, %226 : vector<3x8xf32>
    %c0_104 = arith.constant 0 : index
    %c0_105 = arith.constant 0 : index
    %c32_106 = arith.constant 32 : index
    %228 = vector.load %arg7[%c0_104, %c0_105, %c32_106] : memref<1x16x64xf32, #tpu.memory_space<vmem>>, vector<1x13x8xf32>
    %229 = vector.shape_cast %228 : vector<1x13x8xf32> to vector<13x8xf32>
    %230 = vector.shape_cast %206 : vector<13x8xf32> to vector<1x13x8xf32>
    tpu.vector_store %arg7[%c0_104, %c0_105, %c32_106], %230 {strides = array<i32>} : memref<1x16x64xf32, #tpu.memory_space<vmem>>, vector<1x13x8xf32>,
    %c0_107 = arith.constant 0 : index
    %c13_108 = arith.constant 13 : index
    %c32_109 = arith.constant 32 : index
    %231 = vector.load %arg7[%c0_107, %c13_108, %c32_109] : memref<1x16x64xf32, #tpu.memory_space<vmem>>, vector<1x3x8xf32>
    %232 = vector.shape_cast %231 : vector<1x3x8xf32> to vector<3x8xf32>
    %233 = vector.shape_cast %227 : vector<3x8xf32> to vector<1x3x8xf32>
    tpu.vector_store %arg7[%c0_107, %c13_108, %c32_109], %233 {strides = array<i32>} : memref<1x16x64xf32, #tpu.memory_space<vmem>>, vector<1x3x8xf32>,
    %c0_110 = arith.constant 0 : index
    %c0_111 = arith.constant 0 : index
    %c40 = arith.constant 40 : index
    %c0_112 = arith.constant 0 : index
    %234 = vector.load %arg2[%c0_110, %c0_111, %c40, %c0_112] : memref<1x2x72x9xf32, #tpu.memory_space<vmem>>, vector<1x1x12x9xf32>
    %235 = vector.shape_cast %234 : vector<1x1x12x9xf32> to vector<12x9xf32>
    %c0_113 = arith.constant 0 : index
    %c1_114 = arith.constant 1 : index
    %c40_115 = arith.constant 40 : index
    %c0_116 = arith.constant 0 : index
    %236 = vector.load %arg2[%c0_113, %c1_114, %c40_115, %c0_116] : memref<1x2x72x9xf32, #tpu.memory_space<vmem>>, vector<1x1x12x9xf32>
    %237 = vector.shape_cast %236 : vector<1x1x12x9xf32> to vector<12x9xf32>
    %238 = vector.extract_strided_slice %235 {offsets = [0, 0], sizes = [12, 8], strides = [1, 1]} : vector<12x9xf32> to vector<12x8xf32>
    %cst_117 = arith.constant dense<0.000000e+00> : vector<13x8xf32>
    %239 = tpu.matmul %1, %238, %cst_117 {dimension_numbers = #tpu.dot_dimension_numbers<[1], [0], [0], [1], [0, 0, 1, 1], [], []>} : vector<13x12xf32>, vector<12x8xf32>, vector<13x8xf32> -> vector<13x8xf32>
    %240 = vector.extract_strided_slice %237 {offsets = [0, 0], sizes = [12, 8], strides = [1, 1]} : vector<12x9xf32> to vector<12x8xf32>
    %cst_118 = arith.constant dense<0.000000e+00> : vector<13x8xf32>
    %241 = tpu.matmul %3, %240, %cst_118 {dimension_numbers = #tpu.dot_dimension_numbers<[1], [0], [0], [1], [0, 0, 1, 1], [], []>} : vector<13x12xf32>, vector<12x8xf32>, vector<13x8xf32> -> vector<13x8xf32>
    %242 = arith.addf %239, %241 : vector<13x8xf32>
    %243 = vector.extract_strided_slice %235 {offsets = [0, 1], sizes = [12, 8], strides = [1, 1]} : vector<12x9xf32> to vector<12x8xf32>
    %cst_119 = arith.constant dense<0.000000e+00> : vector<13x8xf32>
    %244 = tpu.matmul %5, %243, %cst_119 {dimension_numbers = #tpu.dot_dimension_numbers<[1], [0], [0], [1], [0, 0, 1, 1], [], []>} : vector<13x12xf32>, vector<12x8xf32>, vector<13x8xf32> -> vector<13x8xf32>
    %245 = arith.addf %242, %244 : vector<13x8xf32>
    %246 = arith.addf %245, %8 : vector<13x8xf32>
    %cst_120 = arith.constant 0.000000e+00 : f32
    %247 = vector.broadcast %cst_120 : f32 to vector<13x8xf32>
    %248 = arith.maximumf %246, %247 : vector<13x8xf32>
    %249 = vector.extract_strided_slice %235 {offsets = [0, 0], sizes = [3, 9], strides = [1, 1]} : vector<12x9xf32> to vector<3x9xf32>
    %250 = vector.extract_strided_slice %237 {offsets = [0, 0], sizes = [3, 9], strides = [1, 1]} : vector<12x9xf32> to vector<3x9xf32>
    %251 = vector.extract_strided_slice %235 {offsets = [4, 0], sizes = [3, 9], strides = [1, 1]} : vector<12x9xf32> to vector<3x9xf32>
    %252 = arith.maximumf %249, %251 : vector<3x9xf32>
    %253 = vector.extract_strided_slice %235 {offsets = [8, 0], sizes = [3, 9], strides = [1, 1]} : vector<12x9xf32> to vector<3x9xf32>
    %254 = arith.maximumf %252, %253 : vector<3x9xf32>
    %255 = vector.extract_strided_slice %237 {offsets = [4, 0], sizes = [3, 9], strides = [1, 1]} : vector<12x9xf32> to vector<3x9xf32>
    %256 = arith.maximumf %250, %255 : vector<3x9xf32>
    %257 = vector.extract_strided_slice %237 {offsets = [8, 0], sizes = [3, 9], strides = [1, 1]} : vector<12x9xf32> to vector<3x9xf32>
    %258 = arith.maximumf %256, %257 : vector<3x9xf32>
    %259 = vector.extract_strided_slice %254 {offsets = [0, 0], sizes = [3, 8], strides = [1, 1]} : vector<3x9xf32> to vector<3x8xf32>
    %cst_121 = arith.constant 0xFF800000 : f32
    %260 = vector.broadcast %cst_121 : f32 to vector<3x8xf32>
    %261 = arith.select %17, %260, %259 : vector<3x8xi1>, vector<3x8xf32>
    %262 = vector.extract_strided_slice %258 {offsets = [0, 0], sizes = [3, 8], strides = [1, 1]} : vector<3x9xf32> to vector<3x8xf32>
    %263 = arith.maximumf %261, %262 : vector<3x8xf32>
    %264 = vector.extract_strided_slice %254 {offsets = [0, 1], sizes = [3, 8], strides = [1, 1]} : vector<3x9xf32> to vector<3x8xf32>
    %265 = arith.maximumf %263, %264 : vector<3x8xf32>
    %266 = arith.mulf %265, %11 : vector<3x8xf32>
    %267 = arith.addf %266, %14 : vector<3x8xf32>
    %cst_122 = arith.constant 0.000000e+00 : f32
    %268 = vector.broadcast %cst_122 : f32 to vector<3x8xf32>
    %269 = arith.maximumf %267, %268 : vector<3x8xf32>
    %c0_123 = arith.constant 0 : index
    %c0_124 = arith.constant 0 : index
    %c40_125 = arith.constant 40 : index
    %270 = vector.load %arg7[%c0_123, %c0_124, %c40_125] : memref<1x16x64xf32, #tpu.memory_space<vmem>>, vector<1x13x8xf32>
    %271 = vector.shape_cast %270 : vector<1x13x8xf32> to vector<13x8xf32>
    %272 = vector.shape_cast %248 : vector<13x8xf32> to vector<1x13x8xf32>
    tpu.vector_store %arg7[%c0_123, %c0_124, %c40_125], %272 {strides = array<i32>} : memref<1x16x64xf32, #tpu.memory_space<vmem>>, vector<1x13x8xf32>,
    %c0_126 = arith.constant 0 : index
    %c13_127 = arith.constant 13 : index
    %c40_128 = arith.constant 40 : index
    %273 = vector.load %arg7[%c0_126, %c13_127, %c40_128] : memref<1x16x64xf32, #tpu.memory_space<vmem>>, vector<1x3x8xf32>
    %274 = vector.shape_cast %273 : vector<1x3x8xf32> to vector<3x8xf32>
    %275 = vector.shape_cast %269 : vector<3x8xf32> to vector<1x3x8xf32>
    tpu.vector_store %arg7[%c0_126, %c13_127, %c40_128], %275 {strides = array<i32>} : memref<1x16x64xf32, #tpu.memory_space<vmem>>, vector<1x3x8xf32>,
    %c0_129 = arith.constant 0 : index
    %c0_130 = arith.constant 0 : index
    %c48 = arith.constant 48 : index
    %c0_131 = arith.constant 0 : index
    %276 = vector.load %arg2[%c0_129, %c0_130, %c48, %c0_131] : memref<1x2x72x9xf32, #tpu.memory_space<vmem>>, vector<1x1x12x9xf32>
    %277 = vector.shape_cast %276 : vector<1x1x12x9xf32> to vector<12x9xf32>
    %c0_132 = arith.constant 0 : index
    %c1_133 = arith.constant 1 : index
    %c48_134 = arith.constant 48 : index
    %c0_135 = arith.constant 0 : index
    %278 = vector.load %arg2[%c0_132, %c1_133, %c48_134, %c0_135] : memref<1x2x72x9xf32, #tpu.memory_space<vmem>>, vector<1x1x12x9xf32>
    %279 = vector.shape_cast %278 : vector<1x1x12x9xf32> to vector<12x9xf32>
    %280 = vector.extract_strided_slice %277 {offsets = [0, 0], sizes = [12, 8], strides = [1, 1]} : vector<12x9xf32> to vector<12x8xf32>
    %cst_136 = arith.constant dense<0.000000e+00> : vector<13x8xf32>
    %281 = tpu.matmul %1, %280, %cst_136 {dimension_numbers = #tpu.dot_dimension_numbers<[1], [0], [0], [1], [0, 0, 1, 1], [], []>} : vector<13x12xf32>, vector<12x8xf32>, vector<13x8xf32> -> vector<13x8xf32>
    %282 = vector.extract_strided_slice %279 {offsets = [0, 0], sizes = [12, 8], strides = [1, 1]} : vector<12x9xf32> to vector<12x8xf32>
    %cst_137 = arith.constant dense<0.000000e+00> : vector<13x8xf32>
    %283 = tpu.matmul %3, %282, %cst_137 {dimension_numbers = #tpu.dot_dimension_numbers<[1], [0], [0], [1], [0, 0, 1, 1], [], []>} : vector<13x12xf32>, vector<12x8xf32>, vector<13x8xf32> -> vector<13x8xf32>
    %284 = arith.addf %281, %283 : vector<13x8xf32>
    %285 = vector.extract_strided_slice %277 {offsets = [0, 1], sizes = [12, 8], strides = [1, 1]} : vector<12x9xf32> to vector<12x8xf32>
    %cst_138 = arith.constant dense<0.000000e+00> : vector<13x8xf32>
    %286 = tpu.matmul %5, %285, %cst_138 {dimension_numbers = #tpu.dot_dimension_numbers<[1], [0], [0], [1], [0, 0, 1, 1], [], []>} : vector<13x12xf32>, vector<12x8xf32>, vector<13x8xf32> -> vector<13x8xf32>
    %287 = arith.addf %284, %286 : vector<13x8xf32>
    %288 = arith.addf %287, %8 : vector<13x8xf32>
    %cst_139 = arith.constant 0.000000e+00 : f32
    %289 = vector.broadcast %cst_139 : f32 to vector<13x8xf32>
    %290 = arith.maximumf %288, %289 : vector<13x8xf32>
    %291 = vector.extract_strided_slice %277 {offsets = [0, 0], sizes = [3, 9], strides = [1, 1]} : vector<12x9xf32> to vector<3x9xf32>
    %292 = vector.extract_strided_slice %279 {offsets = [0, 0], sizes = [3, 9], strides = [1, 1]} : vector<12x9xf32> to vector<3x9xf32>
    %293 = vector.extract_strided_slice %277 {offsets = [4, 0], sizes = [3, 9], strides = [1, 1]} : vector<12x9xf32> to vector<3x9xf32>
    %294 = arith.maximumf %291, %293 : vector<3x9xf32>
    %295 = vector.extract_strided_slice %277 {offsets = [8, 0], sizes = [3, 9], strides = [1, 1]} : vector<12x9xf32> to vector<3x9xf32>
    %296 = arith.maximumf %294, %295 : vector<3x9xf32>
    %297 = vector.extract_strided_slice %279 {offsets = [4, 0], sizes = [3, 9], strides = [1, 1]} : vector<12x9xf32> to vector<3x9xf32>
    %298 = arith.maximumf %292, %297 : vector<3x9xf32>
    %299 = vector.extract_strided_slice %279 {offsets = [8, 0], sizes = [3, 9], strides = [1, 1]} : vector<12x9xf32> to vector<3x9xf32>
    %300 = arith.maximumf %298, %299 : vector<3x9xf32>
    %301 = vector.extract_strided_slice %296 {offsets = [0, 0], sizes = [3, 8], strides = [1, 1]} : vector<3x9xf32> to vector<3x8xf32>
    %cst_140 = arith.constant 0xFF800000 : f32
    %302 = vector.broadcast %cst_140 : f32 to vector<3x8xf32>
    %303 = arith.select %17, %302, %301 : vector<3x8xi1>, vector<3x8xf32>
    %304 = vector.extract_strided_slice %300 {offsets = [0, 0], sizes = [3, 8], strides = [1, 1]} : vector<3x9xf32> to vector<3x8xf32>
    %305 = arith.maximumf %303, %304 : vector<3x8xf32>
    %306 = vector.extract_strided_slice %296 {offsets = [0, 1], sizes = [3, 8], strides = [1, 1]} : vector<3x9xf32> to vector<3x8xf32>
    %307 = arith.maximumf %305, %306 : vector<3x8xf32>
    %308 = arith.mulf %307, %11 : vector<3x8xf32>
    %309 = arith.addf %308, %14 : vector<3x8xf32>
    %cst_141 = arith.constant 0.000000e+00 : f32
    %310 = vector.broadcast %cst_141 : f32 to vector<3x8xf32>
    %311 = arith.maximumf %309, %310 : vector<3x8xf32>
    %c0_142 = arith.constant 0 : index
    %c0_143 = arith.constant 0 : index
    %c48_144 = arith.constant 48 : index
    %312 = vector.load %arg7[%c0_142, %c0_143, %c48_144] : memref<1x16x64xf32, #tpu.memory_space<vmem>>, vector<1x13x8xf32>
    %313 = vector.shape_cast %312 : vector<1x13x8xf32> to vector<13x8xf32>
    %314 = vector.shape_cast %290 : vector<13x8xf32> to vector<1x13x8xf32>
    tpu.vector_store %arg7[%c0_142, %c0_143, %c48_144], %314 {strides = array<i32>} : memref<1x16x64xf32, #tpu.memory_space<vmem>>, vector<1x13x8xf32>,
    %c0_145 = arith.constant 0 : index
    %c13_146 = arith.constant 13 : index
    %c48_147 = arith.constant 48 : index
    %315 = vector.load %arg7[%c0_145, %c13_146, %c48_147] : memref<1x16x64xf32, #tpu.memory_space<vmem>>, vector<1x3x8xf32>
    %316 = vector.shape_cast %315 : vector<1x3x8xf32> to vector<3x8xf32>
    %317 = vector.shape_cast %311 : vector<3x8xf32> to vector<1x3x8xf32>
    tpu.vector_store %arg7[%c0_145, %c13_146, %c48_147], %317 {strides = array<i32>} : memref<1x16x64xf32, #tpu.memory_space<vmem>>, vector<1x3x8xf32>,
    %c0_148 = arith.constant 0 : index
    %c0_149 = arith.constant 0 : index
    %c56 = arith.constant 56 : index
    %c0_150 = arith.constant 0 : index
    %318 = vector.load %arg2[%c0_148, %c0_149, %c56, %c0_150] : memref<1x2x72x9xf32, #tpu.memory_space<vmem>>, vector<1x1x12x9xf32>
    %319 = vector.shape_cast %318 : vector<1x1x12x9xf32> to vector<12x9xf32>
    %c0_151 = arith.constant 0 : index
    %c1_152 = arith.constant 1 : index
    %c56_153 = arith.constant 56 : index
    %c0_154 = arith.constant 0 : index
    %320 = vector.load %arg2[%c0_151, %c1_152, %c56_153, %c0_154] : memref<1x2x72x9xf32, #tpu.memory_space<vmem>>, vector<1x1x12x9xf32>
    %321 = vector.shape_cast %320 : vector<1x1x12x9xf32> to vector<12x9xf32>
    %322 = vector.extract_strided_slice %319 {offsets = [0, 0], sizes = [12, 8], strides = [1, 1]} : vector<12x9xf32> to vector<12x8xf32>
    %cst_155 = arith.constant dense<0.000000e+00> : vector<13x8xf32>
    %323 = tpu.matmul %1, %322, %cst_155 {dimension_numbers = #tpu.dot_dimension_numbers<[1], [0], [0], [1], [0, 0, 1, 1], [], []>} : vector<13x12xf32>, vector<12x8xf32>, vector<13x8xf32> -> vector<13x8xf32>
    %324 = vector.extract_strided_slice %321 {offsets = [0, 0], sizes = [12, 8], strides = [1, 1]} : vector<12x9xf32> to vector<12x8xf32>
    %cst_156 = arith.constant dense<0.000000e+00> : vector<13x8xf32>
    %325 = tpu.matmul %3, %324, %cst_156 {dimension_numbers = #tpu.dot_dimension_numbers<[1], [0], [0], [1], [0, 0, 1, 1], [], []>} : vector<13x12xf32>, vector<12x8xf32>, vector<13x8xf32> -> vector<13x8xf32>
    %326 = arith.addf %323, %325 : vector<13x8xf32>
    %327 = vector.extract_strided_slice %319 {offsets = [0, 1], sizes = [12, 8], strides = [1, 1]} : vector<12x9xf32> to vector<12x8xf32>
    %cst_157 = arith.constant dense<0.000000e+00> : vector<13x8xf32>
    %328 = tpu.matmul %5, %327, %cst_157 {dimension_numbers = #tpu.dot_dimension_numbers<[1], [0], [0], [1], [0, 0, 1, 1], [], []>} : vector<13x12xf32>, vector<12x8xf32>, vector<13x8xf32> -> vector<13x8xf32>
    %329 = arith.addf %326, %328 : vector<13x8xf32>
    %330 = arith.addf %329, %8 : vector<13x8xf32>
    %cst_158 = arith.constant 0.000000e+00 : f32
    %331 = vector.broadcast %cst_158 : f32 to vector<13x8xf32>
    %332 = arith.maximumf %330, %331 : vector<13x8xf32>
    %333 = vector.extract_strided_slice %319 {offsets = [0, 0], sizes = [3, 9], strides = [1, 1]} : vector<12x9xf32> to vector<3x9xf32>
    %334 = vector.extract_strided_slice %321 {offsets = [0, 0], sizes = [3, 9], strides = [1, 1]} : vector<12x9xf32> to vector<3x9xf32>
    %335 = vector.extract_strided_slice %319 {offsets = [4, 0], sizes = [3, 9], strides = [1, 1]} : vector<12x9xf32> to vector<3x9xf32>
    %336 = arith.maximumf %333, %335 : vector<3x9xf32>
    %337 = vector.extract_strided_slice %319 {offsets = [8, 0], sizes = [3, 9], strides = [1, 1]} : vector<12x9xf32> to vector<3x9xf32>
    %338 = arith.maximumf %336, %337 : vector<3x9xf32>
    %339 = vector.extract_strided_slice %321 {offsets = [4, 0], sizes = [3, 9], strides = [1, 1]} : vector<12x9xf32> to vector<3x9xf32>
    %340 = arith.maximumf %334, %339 : vector<3x9xf32>
    %341 = vector.extract_strided_slice %321 {offsets = [8, 0], sizes = [3, 9], strides = [1, 1]} : vector<12x9xf32> to vector<3x9xf32>
    %342 = arith.maximumf %340, %341 : vector<3x9xf32>
    %343 = vector.extract_strided_slice %338 {offsets = [0, 0], sizes = [3, 8], strides = [1, 1]} : vector<3x9xf32> to vector<3x8xf32>
    %cst_159 = arith.constant 0xFF800000 : f32
    %344 = vector.broadcast %cst_159 : f32 to vector<3x8xf32>
    %345 = arith.select %17, %344, %343 : vector<3x8xi1>, vector<3x8xf32>
    %346 = vector.extract_strided_slice %342 {offsets = [0, 0], sizes = [3, 8], strides = [1, 1]} : vector<3x9xf32> to vector<3x8xf32>
    %347 = arith.maximumf %345, %346 : vector<3x8xf32>
    %348 = vector.extract_strided_slice %338 {offsets = [0, 1], sizes = [3, 8], strides = [1, 1]} : vector<3x9xf32> to vector<3x8xf32>
    %349 = arith.maximumf %347, %348 : vector<3x8xf32>
    %350 = arith.mulf %349, %11 : vector<3x8xf32>
    %351 = arith.addf %350, %14 : vector<3x8xf32>
    %cst_160 = arith.constant 0.000000e+00 : f32
    %352 = vector.broadcast %cst_160 : f32 to vector<3x8xf32>
    %353 = arith.maximumf %351, %352 : vector<3x8xf32>
    %c0_161 = arith.constant 0 : index
    %c0_162 = arith.constant 0 : index
    %c56_163 = arith.constant 56 : index
    %354 = vector.load %arg7[%c0_161, %c0_162, %c56_163] : memref<1x16x64xf32, #tpu.memory_space<vmem>>, vector<1x13x8xf32>
    %355 = vector.shape_cast %354 : vector<1x13x8xf32> to vector<13x8xf32>
    %356 = vector.shape_cast %332 : vector<13x8xf32> to vector<1x13x8xf32>
    tpu.vector_store %arg7[%c0_161, %c0_162, %c56_163], %356 {strides = array<i32>} : memref<1x16x64xf32, #tpu.memory_space<vmem>>, vector<1x13x8xf32>,
    %c0_164 = arith.constant 0 : index
    %c13_165 = arith.constant 13 : index
    %c56_166 = arith.constant 56 : index
    %357 = vector.load %arg7[%c0_164, %c13_165, %c56_166] : memref<1x16x64xf32, #tpu.memory_space<vmem>>, vector<1x3x8xf32>
    %358 = vector.shape_cast %357 : vector<1x3x8xf32> to vector<3x8xf32>
    %359 = vector.shape_cast %353 : vector<3x8xf32> to vector<1x3x8xf32>
    tpu.vector_store %arg7[%c0_164, %c13_165, %c56_166], %359 {strides = array<i32>} : memref<1x16x64xf32, #tpu.memory_space<vmem>>, vector<1x3x8xf32>,
    return
  }
  func.func @transform_0(%arg0: i32, %arg1: i32) -> (i32, i32, i32, i32) {
    %c0_i32 = arith.constant 0 : i32
    %c0_i32_0 = arith.constant 0 : i32
    %c0_i32_1 = arith.constant 0 : i32
    %c0_i32_2 = arith.constant 0 : i32
    return %arg0, %c0_i32, %c0_i32_0, %c0_i32_1 : i32, i32, i32, i32
  }
  func.func @transform_1(%arg0: i32, %arg1: i32) -> (i32, i32, i32, i32) {
    %c0_i32 = arith.constant 0 : i32
    %c0_i32_0 = arith.constant 0 : i32
    %c0_i32_1 = arith.constant 0 : i32
    %c0_i32_2 = arith.constant 0 : i32
    return %arg0, %c0_i32, %c0_i32_0, %c0_i32_1 : i32, i32, i32, i32
  }
  func.func @transform_2(%arg0: i32, %arg1: i32) -> (i32, i32, i32) {
    %c0_i32 = arith.constant 0 : i32
    %c0_i32_0 = arith.constant 0 : i32
    %c0_i32_1 = arith.constant 0 : i32
    %c0_i32_2 = arith.constant 0 : i32
    return %c0_i32, %c0_i32_0, %c0_i32_1 : i32, i32, i32
  }
  func.func @transform_3(%arg0: i32, %arg1: i32) -> (i32, i32) {
    %c0_i32 = arith.constant 0 : i32
    %c0_i32_0 = arith.constant 0 : i32
    %c0_i32_1 = arith.constant 0 : i32
    return %c0_i32, %c0_i32_0 : i32, i32
  }
  func.func @transform_4(%arg0: i32, %arg1: i32) -> (i32, i32) {
    %c0_i32 = arith.constant 0 : i32
    %c0_i32_0 = arith.constant 0 : i32
    %c0_i32_1 = arith.constant 0 : i32
    return %c0_i32, %c0_i32_0 : i32, i32
  }
  func.func @transform_5(%arg0: i32, %arg1: i32) -> (i32, i32, i32) {
    %c0_i32 = arith.constant 0 : i32
    %c0_i32_0 = arith.constant 0 : i32
    return %arg0, %c0_i32, %arg1 : i32, i32, i32
  }
}

</mosaic_0001>

<bundles_post_ra>
// kernel: tpu_custom_call.1
= control target key start
LH: loop header
LB: loop body
LE: loop exit
PB: predicated region body
PF: predicated region fallthrough
CT: control target
= control target key end

     0   :  { %10 = vsyncpa [#allocation4], 0  ;;  %s3955_s0 = inlined_call_operand.vmem [shape: f32[2,2,72,9], index: 0, kind: input, shape index: {}]   ;;  %s3956_s1 = inlined_call_operand.vmem [shape: f32[2,2,72,9], index: 1, kind: input, shape index: {}]   ;;  %s3957_s2 = inlined_call_operand.vmem [shape: f32[3,13,12], index: 2, kind: input, shape index: {}]   ;;  %s3958_s3 = inlined_call_operand.vmem [shape: f32[16,1], index: 3, kind: input, shape index: {}]   ;;  %s3959_s4 = inlined_call_operand.vmem [shape: f32[16,1], index: 4, kind: input, shape index: {}]   ;;  %s3960_s5 = inlined_call_operand.hbm [shape: f32[2,16,64], index: 5, kind: output, shape index: {}]  }
   0x1   :  { %12 = vsyncpa [#allocation4 + $0x1], 0  ;;  %s3299_s18 = smov 0   ;;  %s3301_s19 = smov 0  }
   0x2   :  { %s3303_s20 = smov 0   ;;  %s3305_s1 = smov 0  }
   0x3   :  { %s3307_s21 = smov 0   ;;  %s3309_s22 = smov 0  }
   0x4 LB: > { %s2740_s23 = sadd.s32 4294967295, %s3256_s22   ;;  %s2741_s24 = sadd.s32 4294967294, %s3256_s22   ;;  %s3256_s22 = sphi %s3309_s22, %s18_s22   ;;  %s3252_s21 = sphi %s3307_s21, %s3967_s21   ;;  %s3248_s1 = sphi %s3305_s1, %s3966_s1   ;;  %s3244_s20 = sphi %s3303_s20, %s3965_s20   ;;  %s3240_s19 = sphi %s3301_s19, %s3964_s19   ;;  %s3236_s18 = sphi %s3299_s18, %s3963_s18  }
   0x5   : > { %s30_s25 = sadd.s32 1, %s3252_s21  ;;  %s63_s26 = sadd.s32 1, %s3244_s20 }
   0x6   : > { %p32_p0 = scmp.ge.s32.totalorder %s30_s25, 2  ;;  %p70_p1 = scmp.ne.s32.totalorder %s3244_s20, %s3240_s19 }
   0x7   : > { %p165_p2 = scmp.eq.s32.totalorder %s2740_s23, 1  ;;  %p170_p4 = scmp.ne.s32.totalorder %s3240_s19, %s3236_s18 }
   0x8   : > { %s3969_s25 = smov (%p32_p0, %s30_s25), 0  ;;  %p171_p6 = scmp.eq.s32.totalorder %s2741_s24, 1 }
   0x9   : > { %p3337_p3 = por %p165_p2, %p70_p1  ;;  %s60_s28 = ssub.s32 %s3252_s21, %s3969_s25 }
   0xa   : > { %p61_p5 = scmp.eq.s32.totalorder %s60_s28, 0  ;;  %p3348_p7 = por %p171_p6, %p170_p4 }
   0xb   : > { %p2743_p8 = scmp.ge.s32.totalorder %s3256_s22, 2  ;;  %p2746_p9 = scmp.ge.s32.totalorder %s3256_s22, 1 }
   0xc   : > { %s3346_s29 = scalar_select %p61_p5, %s3244_s20, %s63_s26  }
   0xd   : > { %p253_p10 = scmp.lt.s32.totalorder %s3256_s22, 3 }
   0xf   : > { %p254_p11 = pnand %p2746_p9, %p253_p10 }
  0x10   : > { %p292_p12 = scmp.lt.s32.totalorder (!%p254_p11), %s3248_s1, 1  ;;  %s3258_s15 = smov (!%p254_p11), 127  }
  0x11   : > { %257 = sbr.rel (%p254_p11) target bundleno = 541 (0x21d), region = 74  ;;  %s3261_s17 = smov (!%p254_p11), 16  }
  0x12   : > { %s3262_s23 = smov (!%p254_p11), 24   ;;  %s3263_s24 = smov (!%p254_p11), 32  }
  0x13   : > { %s3264_s26 = smov (!%p254_p11), 40   ;;  %s3265_s28 = smov (!%p254_p11), 48  }
  0x14   : > { %s289_s6 = sand.u32 (!%p254_p11), 1, %s3240_s19   ;;  %s3266_s9 = smov (!%p254_p11), 56  }
  0x15   : > { %s2747_s7 = sshll.u32 (!%p254_p11), %s289_s6, 4  ;;  %s3908_s16 = scalar_lea.sflag (!%p254_p11), [#allocation4], %s289_s6 }
  0x16   : > { %v3361_v0 = vld [vmem:[%s3957_s2 + $0x10] sm:$0xff]  ;;  %vm337_vm0 = vcmask 97280   ;;  %v3366_v1 = vld [vmem:[%s3957_s2] sm:$0xff]  ;;  %s293_s10 = scalar_select %p292_p12, %s3248_s1, 1  ;;  %vm344_vm1 = vcmask 1043456   ;;  %v3259_v27 = vmov 0   ;;  %v329_v50 = vlaneseq }
  0x17   : > { %2947 = vmatprep.mubr.msk.f32.mxu0 %vm337_vm0, %v3361_v0  ;;  %2954 = vmatprep.mubr.msk.f32.mxu1 %vm337_vm0, %v3366_v1  ;;  %v3402_v6 = vld [vmem:[%s3957_s2 + $0x8] sm:$0x1f]  ;;  %v3442_v13 = vld [vmem:[%s3957_s2 + $0x18] sm:$0x1f]  ;;  %v3458_v16 = vld [vmem:[%s3957_s2 + $0x20] sm:$0xff]  ;;  %vm631_vm3 = vcmask 59392  }
  0x18   : > { %s3112_s11 = smul.u32 144, %s293_s10  ;;  %v305_v25 = vld [vmem:[%s3959_s4] sm:$0xff]  ;;  %v317_v26 = vld [vmem:[%s3958_s3 + $0xd] sm:$0x7]  ;;  %3179 = vset.pattern.permute.xlu1 %v3259_v27  ;;  %3178 = vset.pattern.permute.xlu0 %v3259_v27  ;;  %v306_v36 = vld [vmem:[%s3959_s4 + $0x8] sm:$0x1f] }
  0x19   : > { %v323_v37 = vld [vmem:[%s3959_s4 + $0xd] sm:$0x7]  ;;  %v330_v56 = vand.u32 127, %v329_v50  ;;  %s3842_s8 = scalar_lea.vmem [#allocation3], %s2747_s7  ;;  %vm917_vm4 = vcmask 124992   ;;  %vm1203_vm5 = vcmask 190592  }
  0x1a   : > { %s3376_s14 = scalar_lea.vmem %s3955_s0, %s3112_s11  ;;  %vm1489_vm6 = vcmask 256192   ;;  %vm1775_vm7 = vcmask 321792   ;;  %vm2061_vm8 = vcmask 387392   ;;  %vm2347_vm9 = vcmask 452992   ;;  %s2846_s10 = sshll.u32 %s3248_s1, 8 }
  0x1b   : > { %v3379_v2 = vld [vmem:[%s3376_s14 + $0x8] sm:$0xf]  ;;  %v3382_v3 = vld [vmem:[%s3376_s14 + $0x10] sm:$0xf]  ;;  %v3389_v4 = vld [vmem:[%s3376_s14] sm:$0xff]  ;;  %vm331_vm2 = vcmp.eq.s32.totalorder %v330_v56, 0 }
  0x1c   : > { %510 = vrot.lane.b32.xlu0 %v3379_v2, %s3258_s15  ;;  %796 = vrot.lane.b32.xlu1 %v3382_v3, %s3258_s15  ;;  %v3392_v5 = vld [vmem:[%s3376_s14 + $0x8] sm:$0xff]  ;;  %v3409_v7 = vld [vmem:[%s3376_s14 + $0x18] sm:$0xf]  ;;  %v608_v34 = vrot.slane %v3389_v4, 4  ;;  %vm629_vm10 = vcmask 61440   ;;  %vm627_vm11 = vcmask 64512  }
  0x1d   : > { %2950 = vmatprep.subr.msk.mxu1 %vm344_vm1, %v3379_v2  ;;  %v3412_v8 = vld [vmem:[%s3376_s14 + $0x10] sm:$0xff]  ;;  %v3419_v10 = vld [vmem:[%s3376_s14 + $0x58] sm:$0xf]  ;;  %v3424_v11 = vld [vmem:[%s3376_s14 + $0x48] sm:$0xff]  ;;  %v882_v28 = vrot.slane %v3392_v5, 4  ;;  %vm911_vm12 = vcmask 127040  }
  0x1e   : > { %2951 = vmatpush3.msk.msra.mxu1 %vm344_vm1, %v3379_v2  ;;  %v3415_v9 = vld [vmem:[%s3376_s14 + $0x50] sm:$0xf]  ;;  %v3445_v14 = vld [vmem:[%s3376_s14 + $0x20] sm:$0xf]  ;;  %v3448_v15 = vld [vmem:[%s3376_s14 + $0x18] sm:$0xff]  ;;  %v1168_v29 = vrot.slane %v3412_v8, 4  ;;  %v3545_v43 = vmax.f32 %v608_v34, %v3379_v2 }
  0x1f   : > { %2952 = vmatprep.subr.mxu1 %v3389_v4  ;;  %2943 = vmatprep.subr.msk.mxu0 %vm344_vm1, %v3415_v9  ;;  %v3433_v12 = vld [vmem:[%s3376_s14 + $0x50] sm:$0xff]  ;;  %v3468_v17 = vld [vmem:[%s3376_s14 + $0x28] sm:$0xf]  ;;  %v3471_v18 = vld [vmem:[%s3376_s14 + $0x20] sm:$0xff]  ;;  %v1454_v30 = vrot.slane %v3448_v15, 4  ;;  %v884_v38 = vmax.f32 %v3392_v5, %v882_v28  ;;  %vm909_vm13 = vcmask 130112  }
  0x20   : > { %508 = vrot.lane.b32.xlu0 %v3389_v4, %s3258_s15  ;;  %794 = vrot.lane.b32.xlu1 %v3392_v5, %s3258_s15  ;;  %v3486_v19 = vld [vmem:[%s3376_s14 + $0x30] sm:$0xf]  ;;  %v3489_v20 = vld [vmem:[%s3376_s14 + $0x28] sm:$0xff]  ;;  %v887_v31 = vrot.slane %v3433_v12, 4  ;;  %v1740_v33 = vrot.slane %v3471_v18, 4  ;;  %v1170_v39 = vmax.f32 %v3412_v8, %v1168_v29  ;;  %vm1197_vm14 = vcmask 192640  }
  0x21   : > { %2953 = vmatpush3.msra.mxu1 %v3389_v4  ;;  %2944 = vmatpush3.msk.msra.mxu0 %vm344_vm1, %v3415_v9  ;;  %v3496_v21 = vld [vmem:[%s3376_s14 + $0x38] sm:$0xf]  ;;  %v3499_v22 = vld [vmem:[%s3376_s14 + $0x30] sm:$0xff]  ;;  %v3506_v23 = vld [vmem:[%s3376_s14 + $0x40] sm:$0xf]  ;;  %v2026_v40 = vrot.slane %v3489_v20, 4  ;;  %v1456_v44 = vmax.f32 %v3448_v15, %v1454_v30  ;;  %v885_v47 = vmax.f32 %v884_v38, %v3382_v3 }
  0x22   : > { %2955 = vmatmul.mubr.msk.f32.vlgmr.msra.gmra.mxu1 %vm337_vm0, %v3402_v6  ;;  %2964 = vmatprep.subr.msk.mxu1 %vm344_vm1, %v3419_v10  ;;  %v3509_v24 = vld [vmem:[%s3376_s14 + $0x38] sm:$0xff]  ;;  %v3531_v35 = vld [vmem:[%s3376_s14 + $0x60] sm:$0xff]  ;;  %v2312_v45 = vrot.slane %v3499_v22, 4  ;;  %v3550_v46 = vld [vmem:[%s3376_s14 + $0x68] sm:$0xff]  ;;  %v1171_v48 = vmax.f32 %v1170_v39, %v3409_v7  ;;  %v1742_v49 = vmax.f32 %v3471_v18, %v1740_v33  ;;  %v889_v54 = vmax.f32 %v3433_v12, %v887_v31  ;;  %s2650_s11 = sshll.u32 %s3842_s8, 4  ;;  %s3903_s11 = int_to_ptr.vmem [resolvable:$true] %s2650_s11 }
  0x23   : > { %2945 = vmatprep.subr.mxu0 %v3424_v11  ;;  %2965 = vmatpush3.msk.msra.mxu1 %vm344_vm1, %v3419_v10  ;;  %v3526_v32 = vld [vmem:[%s3376_s14 + $0x58] sm:$0xff]  ;;  %v1459_v42 = vrot.slane %v3531_v35, 4  ;;  %v1745_v51 = vrot.slane %v3550_v46, 4  ;;  %v3557_v52 = vld [vmem:[%s3376_s14 + $0x70] sm:$0xff]  ;;  %v2028_v53 = vmax.f32 %v3489_v20, %v2026_v40  ;;  %v3565_v59 = vld [vmem:[%s3376_s14 + $0x60] sm:$0xf]  ;;  %v1457_v61 = vmax.f32 %v1456_v44, %v3445_v14 }
  0x24   : > { %1082 = vrot.lane.b32.xlu0 %v3409_v7, %s3258_s15  ;;  %1080 = vrot.lane.b32.xlu1 %v3412_v8, %s3258_s15  ;;  %v1173_v41 = vrot.slane %v3526_v32, 4  ;;  %v2031_v55 = vrot.slane %v3557_v52, 4  ;;  %v3568_v60 = vld [vmem:[%s3376_s14 + $0x68] sm:$0xf]  ;;  %v2314_v62 = vmax.f32 %v3499_v22, %v2312_v45  ;;  %v2598_v63 = vrot.slane %v3509_v24, 4  ;;  %s3180_s1 = scalar_lea.vmem %s3903_s11, 256 }
  0x25   : > { %2946 = vmatpush3.msra.mxu0 %v3424_v11  ;;  %2966 = vmatprep.subr.mxu1 %v3433_v12  ;;  %v1461_v58 = vmax.f32 %v3531_v35, %v1459_v42  ;;  %v890_v2 = vmax.f32 %v889_v54, %v3419_v10  ;;  %v1743_v4 = vmax.f32 %v1742_v49, %v3468_v17  ;;  %v891_v27 = vsel %vm331_vm2, -inf, %v885_v47  ;;  %v3591_v34 = vld [vmem:[%s3376_s14 + $0x70] sm:$0xf]  ;;  %v3596_v38 = vld [vmem:[%s3376_s14 + $0x78] sm:$0xf]  ;;  %p3181_p13 = scmp.ne.s32.totalorder %s3903_s11, %s3180_s1 }
  0x26   : > { %2948 = vmatmul.mubr.msk.f32.vlgmr.msra.gmra.mxu0 %vm337_vm0, %v3442_v13  ;;  %2967 = vmatpush3.msra.mxu1 %v3433_v12  ;;  %v1175_v57 = vmax.f32 %v3526_v32, %v1173_v41  ;;  %v1177_v28 = vsel %vm331_vm2, -inf, %v1171_v48  ;;  %v1463_v10 = vsel %vm331_vm2, -inf, %v1457_v61  ;;  %v1747_v33 = vmax.f32 %v3550_v46, %v1745_v51  ;;  %v3613_v49 = vld [vmem:[%s3376_s14 + $0x78] sm:$0xff]  ;;  %v3622_v54 = vld [vmem:[%s3376_s14 + $0x80] sm:$0xf] }
  0x27   : > { %2961 = vmatprep.mubr.msk.f32.mxu0 %vm337_vm0, %v3458_v16  ;;  %2968 = vmatprep.mubr.msk.f32.mxu1 %vm337_vm0, %v3361_v0  ;;  %v3583_v29 = vmax.f32 %v891_v27, %v890_v2  ;;  %v2315_v39 = vmax.f32 %v2314_v62, %v3496_v21  ;;  %v2600_v40 = vmax.f32 %v3509_v24, %v2598_v63  ;;  %v2317_v50 = vrot.slane %v3613_v49, 4  ;;  %p3182_p0 = pnand %p3181_p13, %p3337_p3 }
  0x28   : > { %1368 = vrot.lane.b32.xlu0 %v3445_v14, %s3258_s15  ;;  %1366 = vrot.lane.b32.xlu1 %v3448_v15, %s3258_s15  ;;  %v1176_v12 = vmax.f32 %v1175_v57, %v3565_v59  ;;  %v1748_v41 = vmax.f32 %v1747_v33, %v3591_v34  ;;  %v613_v51 = vrot.slane %v3424_v11, 4  ;;  %v3634_v62 = vsel %vm331_vm2, -inf, %v3545_v43 }
  0x29   : > { %2969 = vmatmul.mubr.msk.f32.vlgmr.msra.gmra.mxu1 %vm337_vm0, %v3442_v13  ;;  %vm1195_vm15 = vcmask 195712   ;;  %p3183_p1 = pneg %p3182_p0 }
  0x2a   : > { %2982 = vmatprep.mubr.msk.f32.mxu1 %vm337_vm0, %v3458_v16  ;;  %v3585_v30 = vmax.f32 %v1177_v28, %v1176_v12 }
  0x2c   : > { %1654 = vrot.lane.b32.xlu0 %v3468_v17, %s3258_s15  ;;  %1652 = vrot.lane.b32.xlu1 %v3471_v18, %s3258_s15 }
  0x30   : > { %1940 = vrot.lane.b32.xlu0 %v3486_v19, %s3258_s15  ;;  %1938 = vrot.lane.b32.xlu1 %v3489_v20, %s3258_s15 }
  0x34   : > { %2226 = vrot.lane.b32.xlu0 %v3496_v21, %s3258_s15  ;;  %2224 = vrot.lane.b32.xlu1 %v3499_v22, %s3258_s15 }
  0x38   : > { %2512 = vrot.lane.b32.xlu0 %v3506_v23, %s3258_s15  ;;  %2510 = vrot.lane.b32.xlu1 %v3509_v24, %s3258_s15 }
  0x3c   : > { %309 = vperm.xlu1 %3179, %v305_v25   ;;  %320 = vperm.xlu0 %3178, %v317_v26   ;;  %v1462_v25 = vmax.f32 %v1461_v58, %v3568_v60  ;;  %v2029_v26 = vmax.f32 %v2028_v53, %v3486_v19  ;;  %v2319_v53 = vmax.f32 %v3613_v49, %v2317_v50 }
  0x3e   : > { %v3587_v31 = vmax.f32 %v1463_v10, %v1462_v25  ;;  %v2035_v42 = vsel %vm331_vm2, -inf, %v2029_v26  ;;  %v2320_v57 = vmax.f32 %v2319_v53, %v3622_v54 }
  0x40   : > { %314 = vperm.xlu1 %3179, %v306_v36   ;;  %326 = vperm.xlu0 %3178, %v323_v37   ;;  %v1749_v36 = vsel %vm331_vm2, -inf, %v1743_v4  ;;  %v2033_v37 = vmax.f32 %v3557_v52, %v2031_v55  ;;  %v2321_v55 = vsel %vm331_vm2, -inf, %v2315_v39 }
  0x41   : > { %v3605_v45 = vmax.f32 %v1749_v36, %v1748_v41  ;;  %v3636_v63 = vmax.f32 %v2321_v55, %v2320_v57 }
  0x42   : > { %v2034_v44 = vmax.f32 %v2033_v37, %v3596_v38 }
  0x44   : > { %894 = vrot.lane.b32.xlu1 %v885_v47, %s3258_s15  ;;  %1180 = vrot.lane.b32.xlu0 %v1171_v48, %s3258_s15  ;;  %v3607_v47 = vmax.f32 %v2035_v42, %v2034_v44  ;;  %v2601_v48 = vmax.f32 %v2600_v40, %v3506_v23 }
  0x46   : > { %v3627_v58 = vsel %vm331_vm2, -inf, %v2601_v48  ;;  %vm1769_vm2 = vcmask 323840  }
  0x48   : > { %1466 = vrot.lane.b32.xlu1 %v1457_v61, %s3258_s15  ;;  %1752 = vrot.lane.b32.xlu0 %v1743_v4, %s3258_s15  ;;  %v3630_v61 = vmax.f32 %v613_v51, %v3415_v9 }
  0x4a   : > { %v618_v11 = vmax.f32 %v3634_v62, %v3630_v61 }
  0x4c   : > { %2038 = vrot.lane.b32.xlu1 %v2029_v26, %s3258_s15  ;;  %2324 = vrot.lane.b32.xlu0 %v2315_v39, %s3258_s15 }
  0x50   : > { %2610 = vrot.lane.b32.xlu1 %v2601_v48, %s3258_s15  ;;  %620 = vrot.lane.b32.xlu0 %v3545_v43, %s3258_s15  ;;  %v3647_v43 = vld [vmem:[%s3957_s2 + $0x28] sm:$0x1f]  ;;  %s3901_s15 = scalar_lea.hbm %s3960_s5, %s2846_s10 }
  0x8e   : > { %v511_v2 = vpop.permute.xlu0 %510  ;;  %v797_v4 = vpop.permute.xlu1 %796 }
  0x8f   : > { %2957 = vmatprep.subr.msk.mxu0 %vm344_vm1, %v511_v2  ;;  %2978 = vmatprep.subr.msk.mxu1 %vm344_vm1, %v797_v4 }
  0x90   : > { %2958 = vmatpush3.msk.msra.mxu0 %vm344_vm1, %v511_v2  ;;  %2979 = vmatpush3.msk.msra.mxu1 %vm344_vm1, %v797_v4 }
  0x92   : > { %v509_v9 = vpop.permute.xlu0 %508  ;;  %v795_v56 = vpop.permute.xlu1 %794 }
  0x93   : > { %2959 = vmatprep.subr.mxu0 %v509_v9  ;;  %2980 = vmatprep.subr.mxu1 %v795_v56 }
  0x94   : > { %2960 = vmatpush3.msra.mxu0 %v509_v9  ;;  %2981 = vmatpush3.msra.mxu1 %v795_v56 }
  0x95   : > { %2962 = vmatmul.mubr.msk.f32.vlgmr.msra.gmra.mxu0 %vm337_vm0, %v3647_v43  ;;  %2971 = vmatprep.subr.msk.mxu0 %vm344_vm1, %v3382_v3 }
  0x96   : > { %2972 = vmatpush3.msk.msra.mxu0 %vm344_vm1, %v3382_v3  ;;  %2975 = vmatprep.mubr.msk.f32.mxu0 %vm337_vm0, %v3366_v1  ;;  %v1083_v3 = vpop.permute.xlu0 %1082 }
  0x97   : > { %2973 = vmatprep.subr.mxu0 %v3392_v5  ;;  %2983 = vmatmul.mubr.msk.f32.vlgmr.msra.gmra.mxu1 %vm337_vm0, %v3647_v43 }
  0x98   : > { %2974 = vmatpush3.msra.mxu0 %v3392_v5  ;;  %2992 = vmatprep.subr.msk.mxu1 %vm344_vm1, %v3409_v7  ;;  %v1081_v5 = vpop.permute.xlu1 %1080 }
  0x99   : > { %2976 = vmatmul.mubr.msk.f32.vlgmr.msra.gmra.mxu0 %vm337_vm0, %v3402_v6  ;;  %2985 = vmatprep.subr.msk.mxu0 %vm344_vm1, %v3565_v59 }
  0x9a   : > { %2986 = vmatpush3.msk.msra.mxu0 %vm344_vm1, %v3565_v59  ;;  %2993 = vmatpush3.msk.msra.mxu1 %vm344_vm1, %v3409_v7  ;;  %v1369_v7 = vpop.permute.xlu0 %1368 }
  0x9b   : > { %2987 = vmatprep.subr.mxu0 %v3526_v32  ;;  %2994 = vmatprep.subr.mxu1 %v3412_v8 }
  0x9c   : > { %2988 = vmatpush3.msra.mxu0 %v3526_v32  ;;  %2989 = vmatprep.mubr.msk.f32.mxu0 %vm337_vm0, %v3361_v0  ;;  %v2830_v32 = vld [vmem:[%s3376_s14 + $0x80] sm:$0xff] }
  0x9d   : > { %2995 = vmatpush3.msra.mxu1 %v3412_v8  ;;  %2996 = vmatprep.mubr.msk.f32.mxu1 %vm337_vm0, %v3366_v1  ;;  %v1367_v8 = vpop.permute.xlu1 %1366 }
  0x9e   : > { %2990 = vmatmul.mubr.msk.f32.vlgmr.msra.gmra.mxu0 %vm337_vm0, %v3442_v13  ;;  %2997 = vmatmul.mubr.msk.f32.vlgmr.msra.gmra.mxu1 %vm337_vm0, %v3402_v6 }
  0x9f   : > { %2999 = vmatprep.subr.msk.mxu0 %vm344_vm1, %v1083_v3  ;;  %3006 = vmatprep.subr.msk.mxu1 %vm344_vm1, %v3568_v60 }
  0xa0   : > { %3000 = vmatpush3.msk.msra.mxu0 %vm344_vm1, %v1083_v3  ;;  %3007 = vmatpush3.msk.msra.mxu1 %vm344_vm1, %v3568_v60 }
  0xa1   : > { %3001 = vmatprep.subr.mxu0 %v1081_v5  ;;  %3008 = vmatprep.subr.mxu1 %v3531_v35 }
  0xa2   : > { %3002 = vmatpush3.msra.mxu0 %v1081_v5  ;;  %3003 = vmatprep.mubr.msk.f32.mxu0 %vm337_vm0, %v3458_v16 }
  0xa3   : > { %3009 = vmatpush3.msra.mxu1 %v3531_v35  ;;  %3010 = vmatprep.mubr.msk.f32.mxu1 %vm337_vm0, %v3361_v0 }
  0xa4   : > { %3004 = vmatmul.mubr.msk.f32.vlgmr.msra.gmra.mxu0 %vm337_vm0, %v3647_v43  ;;  %3011 = vmatmul.mubr.msk.f32.vlgmr.msra.gmra.mxu1 %vm337_vm0, %v3442_v13 }
  0xa5   : > { %3013 = vmatprep.subr.msk.mxu0 %vm344_vm1, %v3445_v14  ;;  %3020 = vmatprep.subr.msk.mxu1 %vm344_vm1, %v1369_v7 }
  0xa6   : > { %3014 = vmatpush3.msk.msra.mxu0 %vm344_vm1, %v3445_v14  ;;  %3021 = vmatpush3.msk.msra.mxu1 %vm344_vm1, %v1369_v7  ;;  %v1655_v14 = vpop.permute.xlu0 %1654 }
  0xa7   : > { %3015 = vmatprep.subr.mxu0 %v3448_v15  ;;  %3022 = vmatprep.subr.mxu1 %v1367_v8 }
  0xa8   : > { %3016 = vmatpush3.msra.mxu0 %v3448_v15  ;;  %3017 = vmatprep.mubr.msk.f32.mxu0 %vm337_vm0, %v3366_v1  ;;  %v1653_v15 = vpop.permute.xlu1 %1652 }
  0xa9   : > { %3023 = vmatpush3.msra.mxu1 %v1367_v8  ;;  %3024 = vmatprep.mubr.msk.f32.mxu1 %vm337_vm0, %v3458_v16 }
  0xaa   : > { %3018 = vmatmul.mubr.msk.f32.vlgmr.msra.gmra.mxu0 %vm337_vm0, %v3402_v6  ;;  %3025 = vmatmul.mubr.msk.f32.vlgmr.msra.gmra.mxu1 %vm337_vm0, %v3647_v43 }
  0xab   : > { %3027 = vmatprep.subr.msk.mxu0 %vm344_vm1, %v3591_v34  ;;  %3034 = vmatprep.subr.msk.mxu1 %vm344_vm1, %v3468_v17 }
  0xac   : > { %3028 = vmatpush3.msk.msra.mxu0 %vm344_vm1, %v3591_v34  ;;  %3035 = vmatpush3.msk.msra.mxu1 %vm344_vm1, %v3468_v17  ;;  %v1941_v17 = vpop.permute.xlu0 %1940 }
  0xad   : > { %3029 = vmatprep.subr.mxu0 %v3550_v46  ;;  %3036 = vmatprep.subr.mxu1 %v3471_v18 }
  0xae   : > { %3030 = vmatpush3.msra.mxu0 %v3550_v46  ;;  %3031 = vmatprep.mubr.msk.f32.mxu0 %vm337_vm0, %v3361_v0 }
  0xaf   : > { %3037 = vmatpush3.msra.mxu1 %v3471_v18  ;;  %3038 = vmatprep.mubr.msk.f32.mxu1 %vm337_vm0, %v3366_v1  ;;  %v1939_v18 = vpop.permute.xlu1 %1938 }
  0xb0   : > { %3032 = vmatmul.mubr.msk.f32.vlgmr.msra.gmra.mxu0 %vm337_vm0, %v3442_v13  ;;  %3039 = vmatmul.mubr.msk.f32.vlgmr.msra.gmra.mxu1 %vm337_vm0, %v3402_v6 }
  0xb1   : > { %3041 = vmatprep.subr.msk.mxu0 %vm344_vm1, %v1655_v14  ;;  %3048 = vmatprep.subr.msk.mxu1 %vm344_vm1, %v3596_v38 }
  0xb2   : > { %3042 = vmatpush3.msk.msra.mxu0 %vm344_vm1, %v1655_v14  ;;  %3049 = vmatpush3.msk.msra.mxu1 %vm344_vm1, %v3596_v38 }
  0xb3   : > { %3043 = vmatprep.subr.mxu0 %v1653_v15  ;;  %3050 = vmatprep.subr.mxu1 %v3557_v52 }
  0xb4   : > { %3044 = vmatpush3.msra.mxu0 %v1653_v15  ;;  %3045 = vmatprep.mubr.msk.f32.mxu0 %vm337_vm0, %v3458_v16 }
  0xb5   : > { %3051 = vmatpush3.msra.mxu1 %v3557_v52  ;;  %3052 = vmatprep.mubr.msk.f32.mxu1 %vm337_vm0, %v3361_v0 }
  0xb6   : > { %3046 = vmatmul.mubr.msk.f32.vlgmr.msra.gmra.mxu0 %vm337_vm0, %v3647_v43  ;;  %3053 = vmatmul.mubr.msk.f32.vlgmr.msra.gmra.mxu1 %vm337_vm0, %v3442_v13 }
  0xb7   : > { %3055 = vmatprep.subr.msk.mxu0 %vm344_vm1, %v3486_v19  ;;  %3062 = vmatprep.subr.msk.mxu1 %vm344_vm1, %v1941_v17 }
  0xb8   : > { %3056 = vmatpush3.msk.msra.mxu0 %vm344_vm1, %v3486_v19  ;;  %3063 = vmatpush3.msk.msra.mxu1 %vm344_vm1, %v1941_v17  ;;  %v2227_v19 = vpop.permute.xlu0 %2226 }
  0xb9   : > { %3057 = vmatprep.subr.mxu0 %v3489_v20  ;;  %3064 = vmatprep.subr.mxu1 %v1939_v18 }
  0xba   : > { %3058 = vmatpush3.msra.mxu0 %v3489_v20  ;;  %3059 = vmatprep.mubr.msk.f32.mxu0 %vm337_vm0, %v3366_v1  ;;  %v2831_v20 = vld [vmem:[%s3376_s14 + $0x88] sm:$0xf]  ;;  %s3260_s14 = smov 8  }
  0xbb   : > { %3065 = vmatpush3.msra.mxu1 %v1939_v18  ;;  %3066 = vmatprep.mubr.msk.f32.mxu1 %vm337_vm0, %v3458_v16 }
  0xbc   : > { %3060 = vmatmul.mubr.msk.f32.vlgmr.msra.gmra.mxu0 %vm337_vm0, %v3402_v6  ;;  %3067 = vmatmul.mubr.msk.f32.vlgmr.msra.gmra.mxu1 %vm337_vm0, %v3647_v43 }
  0xbd   : > { %3069 = vmatprep.subr.msk.mxu0 %vm344_vm1, %v3622_v54  ;;  %3076 = vmatprep.subr.msk.mxu1 %vm344_vm1, %v3496_v21 }
  0xbe   : > { %3070 = vmatpush3.msk.msra.mxu0 %vm344_vm1, %v3622_v54  ;;  %3077 = vmatpush3.msk.msra.mxu1 %vm344_vm1, %v3496_v21  ;;  %v2225_v21 = vpop.permute.xlu1 %2224 }
  0xbf   : > { %3071 = vmatprep.subr.mxu0 %v3613_v49  ;;  %3078 = vmatprep.subr.mxu1 %v3499_v22 }
  0xc0   : > { %3072 = vmatpush3.msra.mxu0 %v3613_v49  ;;  %3073 = vmatprep.mubr.msk.f32.mxu0 %vm337_vm0, %v3361_v0 }
  0xc1   : > { %3079 = vmatpush3.msra.mxu1 %v3499_v22  ;;  %3080 = vmatprep.mubr.msk.f32.mxu1 %vm337_vm0, %v3366_v1  ;;  %v2513_v22 = vpop.permute.xlu0 %2512 }
  0xc2   : > { %3074 = vmatmul.mubr.msk.f32.vlgmr.msra.gmra.mxu0 %vm337_vm0, %v3442_v13  ;;  %3081 = vmatmul.mubr.msk.f32.vlgmr.msra.gmra.mxu1 %vm337_vm0, %v3402_v6  ;;  %v2511_v35 = vpop.permute.xlu1 %2510 }
  0xc3   : > { %3083 = vmatprep.subr.msk.mxu0 %vm344_vm1, %v2227_v19  ;;  %3090 = vmatprep.subr.msk.mxu1 %vm344_vm1, %v2831_v20 }
  0xc4   : > { %3084 = vmatpush3.msk.msra.mxu0 %vm344_vm1, %v2227_v19  ;;  %3091 = vmatpush3.msk.msra.mxu1 %vm344_vm1, %v2831_v20 }
  0xc5   : > { %3085 = vmatprep.subr.mxu0 %v2225_v21  ;;  %3087 = vmatprep.mubr.msk.f32.mxu0 %vm337_vm0, %v3458_v16  ;;  %v321_v46 = vpop.permute.xlu0 %320 }
  0xc6   : > { %3086 = vmatpush3.msra.mxu0 %v2225_v21  ;;  %3092 = vmatprep.subr.mxu1 %v2830_v32 }
  0xc7   : > { %3088 = vmatmul.mubr.msk.f32.vlgmr.msra.gmra.mxu0 %vm337_vm0, %v3647_v43  ;;  %3097 = vmatprep.subr.msk.mxu0 %vm344_vm1, %v3506_v23 }
  0xc8   : > { %3093 = vmatpush3.msra.mxu1 %v2830_v32  ;;  %3094 = vmatprep.mubr.msk.f32.mxu1 %vm337_vm0, %v3361_v0  ;;  %v3811_v0 = vpop.permute.xlu1 %309 }
  0xc9   : > { %3095 = vmatmul.mubr.msk.f32.vlgmr.msra.gmra.mxu1 %vm337_vm0, %v3442_v13  ;;  %3098 = vmatpush3.msk.msra.mxu0 %vm344_vm1, %v3506_v23  ;;  %v2603_v13 = vrot.slane %v2830_v32, 4 }
  0xca   : > { %3104 = vmatprep.subr.msk.mxu1 %vm344_vm1, %v2513_v22  ;;  %3099 = vmatprep.subr.mxu0 %v3509_v24 }
  0xcb   : > { %3105 = vmatpush3.msk.msra.mxu1 %vm344_vm1, %v2513_v22  ;;  %3100 = vmatpush3.msra.mxu0 %v3509_v24  ;;  %v327_v24 = vpop.permute.xlu0 %326  ;;  %v2605_v59 = vmax.f32 %v2830_v32, %v2603_v13  ;;  %vm1481_vm1 = vcmask 261312  }
  0xcc   : > { %3101 = vmatprep.mubr.msk.f32.mxu0 %vm337_vm0, %v3366_v1  ;;  %3106 = vmatprep.subr.mxu1 %v2511_v35  ;;  %v3819_v23 = vpop.permute.xlu1 %314 }
  0xcd   : > { %3102 = vmatmul.mubr.msk.f32.vlgmr.msra.gmra.mxu0 %vm337_vm0, %v3402_v6  ;;  %3107 = vmatpush3.msra.mxu1 %v2511_v35  ;;  %v2606_v28 = vmax.f32 %v2605_v59, %v2831_v20 }
  0xce   : > { %3108 = vmatprep.mubr.msk.f32.mxu1 %vm337_vm0, %v3458_v16 }
  0xcf   : > { %3109 = vmatmul.mubr.msk.f32.vlgmr.msra.gmra.mxu1 %vm337_vm0, %v3647_v43  ;;  %v1181_v1 = vpop.permute.xlu0 %1180  ;;  %vm1483_vm0 = vcmask 258240  }
  0xd0   : > { %v895_v52 = vpop.permute.xlu1 %894  ;;  %v1183_v12 = vmax.f32 %v3585_v30, %v1181_v1 }
  0xd1   : > { %v897_v60 = vmax.f32 %v3583_v29, %v895_v52  ;;  %v2608_v29 = vmax.f32 %v3627_v58, %v2606_v28 }
  0xd2   : > { %v1184_v6 = vmul.f32 %v1183_v12, %v321_v46 }
  0xd3   : > { %v898_v25 = vmul.f32 %v897_v60, %v321_v46  ;;  %v1753_v27 = vpop.permute.xlu0 %1752 }
  0xd4   : > { %v1467_v26 = vpop.permute.xlu1 %1466  ;;  %v1755_v10 = vmax.f32 %v3605_v45, %v1753_v27  ;;  %v1185_v34 = vadd.f32 %v1184_v6, %v327_v24 }
  0xd5   : > { %v1469_v16 = vmax.f32 %v3587_v31, %v1467_v26  ;;  %v899_v33 = vadd.f32 %v898_v25, %v327_v24 }
  0xd6   : > { %v1756_v37 = vmul.f32 %v1755_v10, %v321_v46  ;;  %v1186_v41 = vmax.f32 %v1185_v34, 0.0 }
  0xd7   : > { %v1470_v36 = vmul.f32 %v1469_v16, %v321_v46  ;;  %v900_v38 = vmax.f32 %v899_v33, 0.0  ;;  %v2325_v40 = vpop.permute.xlu0 %2324 }
  0xd8   : > { %v2039_v39 = vpop.permute.xlu1 %2038  ;;  %v2327_v42 = vmax.f32 %v3636_v63, %v2325_v40  ;;  %v1757_v44 = vadd.f32 %v1756_v37, %v327_v24  ;;  %1200 = vrot.lane.b32.xlu0 %v1186_v41, %s3261_s17 }
  0xd9   : > { %v2041_v30 = vmax.f32 %v3607_v47, %v2039_v39  ;;  %914 = vrot.lane.b32.xlu1 %v900_v38, %s3260_s14  ;;  %v1471_v31 = vadd.f32 %v1470_v36, %v327_v24 }
  0xda   : > { %v2328_v48 = vmul.f32 %v2327_v42, %v321_v46  ;;  %v1758_v50 = vmax.f32 %v1757_v44, 0.0 }
  0xdb   : > { %v2042_v45 = vmul.f32 %v2041_v30, %v321_v46  ;;  %v1472_v49 = vmax.f32 %v1471_v31, 0.0  ;;  %v621_v53 = vpop.permute.xlu0 %620 }
  0xdc   : > { %v2611_v51 = vpop.permute.xlu1 %2610  ;;  %v623_v47 = vmax.f32 %v618_v11, %v621_v53  ;;  %1772 = vrot.lane.b32.xlu0 %v1758_v50, %s3263_s24  ;;  %v2329_v57 = vadd.f32 %v2328_v48, %v327_v24 }
  0xdd   : > { %v2613_v54 = vmax.f32 %v2608_v29, %v2611_v51  ;;  %1486 = vrot.lane.b32.xlu1 %v1472_v49, %s3262_s23  ;;  %v2043_v55 = vadd.f32 %v2042_v45, %v327_v24 }
  0xde   : > { %v624_v63 = vmul.f32 %v623_v47, %v321_v46  ;;  %v2330_v4 = vmax.f32 %v2329_v57, 0.0 }
  0xdf   : > { %v2614_v58 = vmul.f32 %v2613_v54, %v321_v46  ;;  %v2044_v2 = vmax.f32 %v2043_v55, 0.0 }
  0xe0   : > { %v625_v9 = vadd.f32 %v624_v63, %v327_v24  ;;  %2344 = vrot.lane.b32.xlu0 %v2330_v4, %s3265_s28 }
  0xe1   : > { %2058 = vrot.lane.b32.xlu1 %v2044_v2, %s3264_s26  ;;  %v3837_v62 = vadd.f32 %v2614_v58, %v327_v24 }
  0xe2   : > { %v626_v61 = vmax.f32 %v625_v9, 0.0  ;;  %v2956_v11 = vpop.f32.mrf.mxu1 }
  0xe4   : > { %632 = vst.msk [vmem:[%s3842_s8 + $0xd] sm:$0x7] %vm631_vm3, %v626_v61  ;;  %v498_v43 = vpop.f32.mrf.mxu1  ;;  %vm1767_vm3 = vcmask 326912  }
  0xe6   : > { %v2949_v56 = vpop.f32.mrf.mxu0 }
  0xe7   : > { %v504_v17 = vadd.f32 %v2956_v11, %v2949_v56 }
  0xe8   : > { %v414_v8 = vpop.f32.mrf.mxu0 }
  0xe9   : > { %v2970_v3 = vpop.f32.mrf.mxu1  ;;  %v499_v20 = vadd.f32 %v498_v43, %v414_v8 }
  0xeb   : > { %v706_v14 = vpop.f32.mrf.mxu1 }
 0x14a   : > { %v1201_v7 = vpop.permute.xlu0 %1200 }
 0x14b   : > { %v915_v5 = vpop.permute.xlu1 %914 }
 0x14c   : > { %918 = vst.msk [vmem:[%s3842_s8 + $0xd] sm:$0x7] %vm917_vm4, %v915_v5  ;;  %vm2055_vm4 = vcmask 389440  }
 0x14d   : > { %1204 = vst.msk [vmem:[%s3842_s8 + $0xd] sm:$0x7] %vm1203_vm5, %v1201_v7  ;;  %vm2053_vm5 = vcmask 392512  }
 0x14e   : > { %v1773_v18 = vpop.permute.xlu0 %1772 }
 0x14f   : > { %v1487_v15 = vpop.permute.xlu1 %1486 }
 0x150   : > { %1490 = vst.msk [vmem:[%s3842_s8 + $0xd] sm:$0x7] %vm1489_vm6, %v1487_v15  ;;  %vm2341_vm6 = vcmask 455040  }
 0x151   : > { %1776 = vst.msk [vmem:[%s3842_s8 + $0xd] sm:$0x7] %vm1775_vm7, %v1773_v18  ;;  %vm2339_vm7 = vcmask 458112  }
 0x152   : > { %v2345_v24 = vpop.permute.xlu0 %2344 }
 0x153   : > { %v2059_v13 = vpop.permute.xlu1 %2058 }
 0x154   : > { %2062 = vst.msk [vmem:[%s3842_s8 + $0xd] sm:$0x7] %vm2061_vm8, %v2059_v13  ;;  %vm2627_vm8 = vcmask 520640  }
 0x155   : > { %v2963_v19 = vpop.f32.mrf.mxu0  ;;  %2348 = vst.msk [vmem:[%s3842_s8 + $0xd] sm:$0x7] %vm2347_vm9, %v2345_v24  ;;  %vm2625_vm9 = vcmask 523712  }
 0x156   : > { %v597_v21 = vadd.f32 %v2963_v19, %v504_v17 }
 0x157   : > { %v587_v32 = vpop.f32.mrf.mxu0  ;;  %v2984_v22 = vpop.f32.mrf.mxu1 }
 0x158   : > { %v599_v35 = vadd.f32 %v597_v21, %v3819_v23  ;;  %v596_v46 = vadd.f32 %v587_v32, %v499_v20 }
 0x159   : > { %v2977_v52 = vpop.f32.mrf.mxu0  ;;  %v867_v12 = vpop.f32.mrf.mxu1 }
 0x15a   : > { %v601_v1 = vmax.f32 %v599_v35, 0.0  ;;  %v598_v59 = vadd.f32 %v596_v46, %v3811_v0  ;;  %v790_v60 = vadd.f32 %v2977_v52, %v2970_v3 }
 0x15b   : > { %v784_v25 = vpop.f32.mrf.mxu0 }
 0x15c   : > { %v600_v6 = vmax.f32 %v598_v59, 0.0  ;;  %v877_v26 = vadd.f32 %v2984_v22, %v790_v60  ;;  %v785_v27 = vadd.f32 %v784_v25, %v706_v14  ;;  %630 = vst.msk [vmem:[%s3842_s8 + $0x8] sm:$0x1f] %vm629_vm10, %v601_v1  ;;  %vm2633_vm10 = vcmask 518592  }
 0x15e   : > { %v879_v28 = vadd.f32 %v877_v26, %v3819_v23  ;;  %v876_v16 = vadd.f32 %v867_v12, %v785_v27  ;;  %v2991_v10 = vpop.f32.mrf.mxu0  ;;  %v2998_v33 = vpop.f32.mrf.mxu1  ;;  %628 = vst.msk [vmem:[%s3842_s8] sm:$0xff] %vm627_vm11, %v600_v6 }
 0x15f   : > { %v1076_v40 = vadd.f32 %v2998_v33, %v2991_v10 }
 0x160   : > { %v881_v34 = vmax.f32 %v879_v28, 0.0  ;;  %v878_v36 = vadd.f32 %v876_v16, %v3811_v0  ;;  %v992_v37 = vpop.f32.mrf.mxu0  ;;  %v1070_v38 = vpop.f32.mrf.mxu1 }
 0x161   : > { %v1071_v30 = vadd.f32 %v1070_v38, %v992_v37 }
 0x162   : > { %v880_v39 = vmax.f32 %v878_v36, 0.0  ;;  %905 = vrot.lane.b32.xlu0 %v881_v34, %s3260_s14 }
 0x164   : > { %v3005_v29 = vpop.f32.mrf.mxu0  ;;  %v3012_v41 = vpop.f32.mrf.mxu1  ;;  %903 = vrot.lane.b32.xlu1 %v880_v39, %s3260_s14 }
 0x165   : > { %v1163_v42 = vadd.f32 %v3005_v29, %v1076_v40 }
 0x166   : > { %v1153_v31 = vpop.f32.mrf.mxu0  ;;  %v1278_v44 = vpop.f32.mrf.mxu1 }
 0x167   : > { %v1165_v45 = vadd.f32 %v1163_v42, %v3819_v23  ;;  %v1162_v48 = vadd.f32 %v1153_v31, %v1071_v30 }
 0x169   : > { %v1167_v49 = vmax.f32 %v1165_v45, 0.0  ;;  %v1164_v50 = vadd.f32 %v1162_v48, %v3811_v0 }
 0x16a   : > { %v3019_v51 = vpop.f32.mrf.mxu0  ;;  %v3026_v53 = vpop.f32.mrf.mxu1 }
 0x16b   : > { %v1166_v54 = vmax.f32 %v1164_v50, 0.0  ;;  %v1362_v47 = vadd.f32 %v3019_v51, %v3012_v41  ;;  %1191 = vrot.lane.b32.xlu1 %v1167_v49, %s3261_s17 }
 0x16c   : > { %v1356_v55 = vpop.f32.mrf.mxu0  ;;  %v1439_v57 = vpop.f32.mrf.mxu1 }
 0x16d   : > { %v1449_v58 = vadd.f32 %v3026_v53, %v1362_v47  ;;  %v1357_v63 = vadd.f32 %v1356_v55, %v1278_v44  ;;  %1189 = vrot.lane.b32.xlu0 %v1166_v54, %s3261_s17  ;;  %s3267_s17 = smov [#allocation3]  }
 0x16f   : > { %v1451_v2 = vadd.f32 %v1449_v58, %v3819_v23  ;;  %v1448_v4 = vadd.f32 %v1439_v57, %v1357_v63 }
 0x170   : > { %v3033_v9 = vpop.f32.mrf.mxu0  ;;  %v3040_v61 = vpop.f32.mrf.mxu1 }
 0x171   : > { %v1453_v11 = vmax.f32 %v1451_v2, 0.0  ;;  %v1450_v43 = vadd.f32 %v1448_v4, %v3811_v0  ;;  %v1648_v7 = vadd.f32 %v3040_v61, %v3033_v9  ;;  %v2616_v2 = vmax.f32 %v3837_v62, 0.0 }
 0x172   : > { %v1564_v56 = vpop.f32.mrf.mxu0  ;;  %v1642_v3 = vpop.f32.mrf.mxu1 }
 0x173   : > { %v1452_v5 = vmax.f32 %v1450_v43, 0.0  ;;  %1477 = vrot.lane.b32.xlu0 %v1453_v11, %s3262_s23  ;;  %v1643_v15 = vadd.f32 %v1642_v3, %v1564_v56 }
 0x175   : > { %1475 = vrot.lane.b32.xlu1 %v1452_v5, %s3262_s23  ;;  %s3184_s23 = sshll.u32 %s3267_s17, 4  ;;  %s3185_s23 = int_to_ptr.vmem [resolvable:$false] %s3184_s23 }
 0x176   : > { %v3047_v8 = vpop.f32.mrf.mxu0  ;;  %v3054_v14 = vpop.f32.mrf.mxu1  ;;  %p3187_p2 = scmp.lt.s32.totalorder %s3903_s11, %s3185_s23 }
 0x177   : > { %v1735_v17 = vadd.f32 %v3047_v8, %v1648_v7 }
 0x178   : > { %v1725_v18 = vpop.f32.mrf.mxu0  ;;  %v1850_v19 = vpop.f32.mrf.mxu1 }
 0x179   : > { %v1737_v20 = vadd.f32 %v1735_v17, %v3819_v23  ;;  %v1734_v21 = vadd.f32 %v1725_v18, %v1643_v15 }
 0x17b   : > { %v1739_v32 = vmax.f32 %v1737_v20, 0.0  ;;  %v1736_v22 = vadd.f32 %v1734_v21, %v3811_v0 }
 0x17c   : > { %v3061_v35 = vpop.f32.mrf.mxu0  ;;  %v3068_v46 = vpop.f32.mrf.mxu1 }
 0x17d   : > { %v1738_v13 = vmax.f32 %v1736_v22, 0.0  ;;  %v1934_v24 = vadd.f32 %v3061_v35, %v3054_v14  ;;  %1763 = vrot.lane.b32.xlu1 %v1739_v32, %s3263_s24 }
 0x17e   : > { %v1928_v52 = vpop.f32.mrf.mxu0  ;;  %v2011_v1 = vpop.f32.mrf.mxu1 }
 0x17f   : > { %v2021_v59 = vadd.f32 %v3068_v46, %v1934_v24  ;;  %v1929_v60 = vadd.f32 %v1928_v52, %v1850_v19  ;;  %1761 = vrot.lane.b32.xlu0 %v1738_v13, %s3263_s24  ;;  %s3186_s24 = scalar_lea.vmem %s3185_s23, 512 }
 0x180   : > { %p3188_p4 = scmp.lt.s32.totalorder %s3186_s24, %s3180_s1 }
 0x181   : > { %v2023_v12 = vadd.f32 %v2021_v59, %v3819_v23  ;;  %v2020_v25 = vadd.f32 %v2011_v1, %v1929_v60 }
 0x182   : > { %v3075_v6 = vpop.f32.mrf.mxu0  ;;  %v3082_v26 = vpop.f32.mrf.mxu1  ;;  %p3189_p5 = por %p3188_p4, %p3187_p2 }
 0x183   : > { %v2025_v27 = vmax.f32 %v2023_v12, 0.0  ;;  %v2022_v28 = vadd.f32 %v2020_v25, %v3811_v0  ;;  %v2220_v34 = vadd.f32 %v3082_v26, %v3075_v6 }
 0x184   : > { %v2136_v16 = vpop.f32.mrf.mxu0  ;;  %v2214_v33 = vpop.f32.mrf.mxu1  ;;  %p3190_p6 = pnand %p3189_p5, %p3183_p1 }
 0x185   : > { %v2024_v10 = vmax.f32 %v2022_v28, 0.0  ;;  %2049 = vrot.lane.b32.xlu0 %v2025_v27, %s3264_s26  ;;  %v2215_v37 = vadd.f32 %v2214_v33, %v2136_v16 }
 0x187   : > { %v3089_v36 = vpop.f32.mrf.mxu0  ;;  %2047 = vrot.lane.b32.xlu1 %v2024_v10, %s3264_s26 }
 0x188   : > { %v2307_v38 = vadd.f32 %v3089_v36, %v2220_v34 }
 0x189   : > { %v3096_v39 = vpop.f32.mrf.mxu1  ;;  %v2297_v40 = vpop.f32.mrf.mxu0 }
 0x18a   : > { %v2309_v29 = vadd.f32 %v2307_v38, %v3819_v23  ;;  %v2306_v41 = vadd.f32 %v2297_v40, %v2215_v37 }
 0x18b   : > { %v2422_v30 = vpop.f32.mrf.mxu1 }
 0x18c   : > { %v2311_v42 = vmax.f32 %v2309_v29, 0.0  ;;  %v2308_v31 = vadd.f32 %v2306_v41, %v3811_v0 }
 0x18d   : > { %v3103_v44 = vpop.f32.mrf.mxu0 }
 0x18e   : > { %v2310_v45 = vmax.f32 %v2308_v31, 0.0  ;;  %v2506_v48 = vadd.f32 %v3103_v44, %v3096_v39  ;;  %2335 = vrot.lane.b32.xlu1 %v2311_v42, %s3265_s28 }
 0x18f   : > { %v3110_v49 = vpop.f32.mrf.mxu1  ;;  %v2500_v50 = vpop.f32.mrf.mxu0 }
 0x190   : > { %v2593_v51 = vadd.f32 %v3110_v49, %v2506_v48  ;;  %v2501_v53 = vadd.f32 %v2500_v50, %v2422_v30  ;;  %2333 = vrot.lane.b32.xlu0 %v2310_v45, %s3265_s28 }
 0x191   : > { %v2583_v54 = vpop.f32.mrf.mxu1 }
 0x192   : > { %v2595_v47 = vadd.f32 %v2593_v51, %v3819_v23  ;;  %v2592_v55 = vadd.f32 %v2583_v54, %v2501_v53 }
 0x194   : > { %v2597_v57 = vmax.f32 %v2595_v47, 0.0  ;;  %v2594_v58 = vadd.f32 %v2592_v55, %v3811_v0 }
 0x196   : > { %v2596_v63 = vmax.f32 %v2594_v58, 0.0  ;;  %2621 = vrot.lane.b32.xlu0 %v2597_v57, %s3266_s9 }
 0x198   : > { %2619 = vrot.lane.b32.xlu1 %v2596_v63, %s3266_s9 }
 0x19c   : > { %2630 = vrot.lane.b32.xlu1 %v2616_v2, %s3266_s9 }
 0x1d4   : > { %v906_v4 = vpop.permute.xlu0 %905 }
 0x1d5   : > { %912 = vst.msk [vmem:[%s3842_s8 + $0x8] sm:$0x1f] %vm911_vm12, %v906_v4 }
 0x1d6   : > { %v904_v23 = vpop.permute.xlu1 %903 }
 0x1d7   : > { %910 = vst.msk [vmem:[%s3842_s8] sm:$0xff] %vm909_vm13, %v904_v23 }
 0x1dd   : > { %v1192_v0 = vpop.permute.xlu1 %1191 }
 0x1de   : > { %1198 = vst.msk [vmem:[%s3842_s8 + $0x8] sm:$0x1f] %vm1197_vm14, %v1192_v0 }
 0x1df   : > { %v1190_v9 = vpop.permute.xlu0 %1189 }
 0x1e0   : > { %1196 = vst.msk [vmem:[%s3842_s8] sm:$0xff] %vm1195_vm15, %v1190_v9 }
 0x1e5   : > { %v1478_v62 = vpop.permute.xlu0 %1477 }
 0x1e6   : > { %1484 = vst.msk [vmem:[%s3842_s8 + $0x8] sm:$0x1f] %vm1483_vm0, %v1478_v62 }
 0x1e7   : > { %v1476_v61 = vpop.permute.xlu1 %1475 }
 0x1e8   : > { %1482 = vst.msk [vmem:[%s3842_s8] sm:$0xff] %vm1481_vm1, %v1476_v61 }
 0x1ef   : > { %v1764_v11 = vpop.permute.xlu1 %1763 }
 0x1f0   : > { %1770 = vst.msk [vmem:[%s3842_s8 + $0x8] sm:$0x1f] %vm1769_vm2, %v1764_v11 }
 0x1f1   : > { %v1762_v43 = vpop.permute.xlu0 %1761 }
 0x1f2   : > { %1768 = vst.msk [vmem:[%s3842_s8] sm:$0xff] %vm1767_vm3, %v1762_v43 }
 0x1f7   : > { %v2050_v56 = vpop.permute.xlu0 %2049 }
 0x1f8   : > { %2056 = vst.msk [vmem:[%s3842_s8 + $0x8] sm:$0x1f] %vm2055_vm4, %v2050_v56 }
 0x1f9   : > { %v2048_v3 = vpop.permute.xlu1 %2047 }
 0x1fa   : > { %2054 = vst.msk [vmem:[%s3842_s8] sm:$0xff] %vm2053_vm5, %v2048_v3 }
 0x200   : > { %v2336_v5 = vpop.permute.xlu1 %2335 }
 0x201   : > { %2342 = vst.msk [vmem:[%s3842_s8 + $0x8] sm:$0x1f] %vm2341_vm6, %v2336_v5 }
 0x202   : > { %v2334_v7 = vpop.permute.xlu0 %2333 }
 0x203   : > { %2340 = vst.msk [vmem:[%s3842_s8] sm:$0xff] %vm2339_vm7, %v2334_v7 }
 0x208   : > { %v2622_v8 = vpop.permute.xlu0 %2621 }
 0x209   : > { %2628 = vst.msk [vmem:[%s3842_s8 + $0x8] sm:$0x1f] %vm2627_vm8, %v2622_v8 }
 0x20a   : > { %v2620_v14 = vpop.permute.xlu1 %2619 }
 0x20b   : > { %2626 = vst.msk [vmem:[%s3842_s8] sm:$0xff] %vm2625_vm9, %v2620_v14 }
 0x20e   : > { %v2631_v15 = vpop.permute.xlu1 %2630 }
 0x20f   : > { %2634 = vst.msk [vmem:[%s3842_s8 + $0xd] sm:$0x7] %vm2633_vm10, %v2631_v15 }
 0x210   : > { %3193 = shalt.err (!%p3190_p6)
}
 0x211   : > { %s3194_s26 = scalar_lea.hbm %s3901_s15, 256  ;;  %s3198_s7 = scalar_lea.hbm %s3960_s5, 512 }
 0x212   : > { %p3195_p9 = scmp.ne.s32.totalorder %s3901_s15, %s3194_s26  ;;  %p3199_p12 = scmp.lt.s32.totalorder %s3901_s15, %s3960_s5 }
 0x213   : > { %p3200_p13 = scmp.lt.s32.totalorder %s3198_s7, %s3194_s26 }
 0x214   : > { %p3196_p10 = pnand %p3195_p9, %p3337_p3 }
 0x215   : > { %p3201_p0 = por %p3200_p13, %p3199_p12 }
 0x216   : > { %p3197_p11 = pneg %p3196_p10 }
 0x218   : > { %p3202_p1 = pnand %p3201_p0, %p3197_p11 }
 0x21a   : > { %3205 = shalt.err (!%p3202_p1)
}
 0x21b   : > { %s3268_s10 = smov 128  }
 0x21c   : > { %3113 = dma.vmem_to_hbm [thread:$0]  (%p3337_p3), %s3903_s11, 256, %s3901_s15, %s3908_s16, %s3268_s10, %s3268_s10, %s3260_s14  }
 0x21d PF: > { %s2665_s12 = sand.u32 1, %s3236_s18   ;;  %p3116_p2 = pnand %p2743_p8, %p3348_p7 }
 0x21e   : > { %s2666_s13 = scalar_lea.sflag [#allocation4], %s2665_s12 }
 0x21f   : > { %p3117_p4 = pneg %p3116_p2 }
 0x221   : > { %3231 = dma.done.wait (%p3117_p4), %s2666_s13, 256  }
 0x222   : > { %3233 = vsyncadd (%p3117_p4), %s2666_s13, 4294967040  ;;  %s18_s22 = sadd.s32 1, %s3256_s22   ;;  %s3963_s18 = smov %s3240_s19 }
 0x223   : > { %p15_p5 = scmp.ge.s32.totalorder %s18_s22, 4   ;;  %s3964_s19 = smov %s3244_s20 }
 0x224   : > { %s3965_s20 = smov %s3346_s29  ;;  %s3966_s1 = smov %s3252_s21 }
 0x225   : > { %s3967_s21 = smov %s3969_s25  ;;  %17 = sbr.rel (!%p15_p5) target bundleno = 4 (0x4), region = 124 }
 0x22a   :  { %2671 = vsyncpa [#allocation4], 1 }
 0x22b   :  { %2673 = vsyncpa [#allocation4 + $0x1], 1 }

</bundles_post_ra>
